<compile_context>
chip_gen: v7x
topology: tpu7x:2x2x1
jax: 0.10.0
libtpu: 0.0.40
codegen_flags: <defaults>
</compile_context>

<pallas_src>
import jax
import jax.numpy as jnp
from jax.experimental import pallas as pl
from jax.experimental.pallas import tpu as pltpu

# ---------------------------------------------------------------------------
# Problem sizes (small, consistent with the module)
# ---------------------------------------------------------------------------
BATCH = 8          # >1 so batch-norm statistics are well defined
LATENT_DIM = 32    # opt.latent_dim
CHANNELS = 4       # opt.channels
IMG_SIZE = 16      # opt.img_size
IMG_FLAT = CHANNELS * IMG_SIZE * IMG_SIZE   # 1024

HIDDEN = [128, 256, 512, 1024]
BN_EPS = 0.8       # BatchNorm1d(out_feat, 0.8) -> eps = 0.8


def _pick_tn():
    """Lane-tile width for the final 1024x1024 layer, per TPU generation."""
    try:
        kind = jax.devices()[0].device_kind.lower()
    except Exception:
        kind = ""
    # v5e: slower HBM -> smaller tiles keep more DMA in flight behind compute.
    if "v5 lite" in kind or "v5e" in kind:
        return 256
    # v6e / v7x: per-grid-step overhead dominates; 2 big lane-dense tiles.
    return 512


def _lrelu(x):
    return jnp.where(x > 0, x, 0.2 * x)


# ---------------------------------------------------------------------------
# Kernel 1: early layers  z -> h (B, 1024), single invocation, bf16 output
# ---------------------------------------------------------------------------
def _stem_kernel(z_ref,
                 w1_ref, b1_ref,
                 w2_ref, g2_ref, be2_ref,
                 w3_ref, g3_ref, be3_ref,
                 w4_ref, g4_ref, be4_ref,
                 h_ref):
    inv_b = 1.0 / z_ref.shape[0]  # static

    def mm(x, w_ref):
        # bf16 MXU inputs, f32 accumulation.
        return jnp.dot(x.astype(jnp.bfloat16), w_ref[...],
                       preferred_element_type=jnp.float32)

    def batchnorm(x, gamma, beta):
        # Training-mode BN, single pass (sum + sum-of-squares).
        # Linear biases feeding BN are omitted: cancelled by mean subtraction.
        s1 = jnp.sum(x, axis=0, keepdims=True)
        s2 = jnp.sum(x * x, axis=0, keepdims=True)
        mu = s1 * inv_b
        var = jnp.maximum(s2 * inv_b - mu * mu, 0.0)   # guard tiny negatives
        return (x - mu) * jax.lax.rsqrt(var + BN_EPS) * gamma + beta

    h = _lrelu(mm(z_ref[...], w1_ref) + b1_ref[...])
    h = _lrelu(batchnorm(mm(h, w2_ref), g2_ref[...], be2_ref[...]))
    h = _lrelu(batchnorm(mm(h, w3_ref), g3_ref[...], be3_ref[...]))
    h = _lrelu(batchnorm(mm(h, w4_ref), g4_ref[...], be4_ref[...]))
    # Cast once; the head kernel's MXU consumes bf16 directly (bit-identical
    # to casting per-step, but without the redundant per-step VPU work).
    h_ref[...] = h.astype(jnp.bfloat16)


# ---------------------------------------------------------------------------
# Kernel 2: Linear(1024, C*H*W) + Tanh, streamed over the output feature dim
# ---------------------------------------------------------------------------
def _head_kernel(h_ref, w5_ref, b5_ref, out_ref):
    j = pl.program_id(0)
    # b5 is fully VMEM-resident as (n_blocks, TN); slice the row for this tile.
    bias = b5_ref[pl.ds(j, 1), :]                         # (1, TN)
    acc = jnp.dot(h_ref[...], w5_ref[...],                # bf16 x bf16 -> f32
                  preferred_element_type=jnp.float32)
    out_ref[...] = jnp.tanh(acc + bias)


# ---------------------------------------------------------------------------
# Wrapper
# ---------------------------------------------------------------------------
def generator_forward(z, params, tn=None):
    """z: (B, LATENT_DIM) f32 -> img: (B, C, H, W) f32."""
    B = z.shape[0]
    tn = _pick_tn() if tn is None else tn
    n_blocks = IMG_FLAT // tn

    # ---- Stage 1: stem (runs once, everything VMEM-resident) ----
    stem_inputs = (z,
                   params["w1"], params["b1"],
                   params["w2"], params["g2"], params["be2"],
                   params["w3"], params["g3"], params["be3"],
                   params["w4"], params["g4"], params["be4"])
    dims = [LATENT_DIM] + HIDDEN
    stem_macs = sum(a * b for a, b in zip(dims[:-1], dims[1:]))
    stem_cost = pl.CostEstimate(
        flops=2 * B * stem_macs,
        transcendentals=sum(HIDDEN[1:]),                      # rsqrt
        bytes_accessed=(2 * stem_macs                         # bf16 weights
                        + 4 * (HIDDEN[0] + 2 * sum(HIDDEN[1:]))
                        + 4 * B * LATENT_DIM
                        + 2 * B * HIDDEN[-1]))
    h = pl.pallas_call(
        _stem_kernel,
        out_shape=jax.ShapeDtypeStruct((B, HIDDEN[-1]), jnp.bfloat16),
        compiler_params=pltpu.CompilerParams(vmem_limit_bytes=32 << 20),
        cost_estimate=stem_cost,
    )(*stem_inputs)

    # ---- Stage 2: head (w5 streamed over N; grid axis is data-parallel) ----
    b5_tiles = params["b5"].reshape(n_blocks, tn)   # VMEM-resident, in-kernel slice
    head_cost = pl.CostEstimate(
        flops=2 * B * HIDDEN[-1] * IMG_FLAT,
        transcendentals=B * IMG_FLAT,                         # tanh
        bytes_accessed=(2 * HIDDEN[-1] * IMG_FLAT             # bf16 w5
                        + 4 * IMG_FLAT                        # b5
                        + 2 * B * HIDDEN[-1]                  # h (bf16)
                        + 4 * B * IMG_FLAT))                  # output
    flat = pl.pallas_call(
        _head_kernel,
        out_shape=jax.ShapeDtypeStruct((B, IMG_FLAT), jnp.float32),
        grid_spec=pltpu.PrefetchScalarGridSpec(
            num_scalar_prefetch=0,
            grid=(n_blocks,),
            in_specs=[
                pl.BlockSpec((B, HIDDEN[-1]), lambda j: (0, 0)),    # h resident
                pl.BlockSpec((HIDDEN[-1], tn), lambda j: (0, j)),   # w5 streamed
                pl.BlockSpec((n_blocks, tn), lambda j: (0, 0)),     # b5 resident
            ],
            out_specs=pl.BlockSpec((B, tn), lambda j: (0, j)),
        ),
        compiler_params=pltpu.CompilerParams(
            # Output tiles are independent -> 'parallel' lets v7x's two
            # TensorCores split the w5 stream; harmless on v5e/v6e (1 TC).
            dimension_semantics=("parallel",),
            vmem_limit_bytes=32 << 20),
        cost_estimate=head_cost,
    )(h, params["w5"], b5_tiles)

    # img.view(B, C, H, W) — plain JAX reshape outside the kernel.
    return flat.reshape(B, CHANNELS, IMG_SIZE, IMG_SIZE)


# ---------------------------------------------------------------------------
# Deterministic parameter init (PyTorch-Linear-style uniform bounds)
# Weights stored in bf16; biases / BN affine params in f32.
# ---------------------------------------------------------------------------
def init_params(key):
    dims = [LATENT_DIM] + HIDDEN + [IMG_FLAT]
    params = {}
    keys = jax.random.split(key, 2 * (len(dims) - 1))
    for i, (fin, fout) in enumerate(zip(dims[:-1], dims[1:])):
        bound = 1.0 / float(fin) ** 0.5
        w = jax.random.uniform(keys[2 * i], (fin, fout), jnp.float32,
                               -bound, bound)
        b = jax.random.uniform(keys[2 * i + 1], (1, fout), jnp.float32,
                               -bound, bound)
        params[f"w{i + 1}"] = w.astype(jnp.bfloat16)
        params[f"b{i + 1}"] = b
    # BatchNorm affine params for layers 2..4 (PyTorch defaults: gamma=1, beta=0)
    for i, fout in zip((2, 3, 4), HIDDEN[1:]):
        params[f"g{i}"] = jnp.ones((1, fout), jnp.float32)
        params[f"be{i}"] = jnp.zeros((1, fout), jnp.float32)
    return params


# ---------------------------------------------------------------------------
# Pure-JAX reference (keeps the BN-cancelled biases b2/b3/b4 and a two-pass
# variance, so it also checks those kernel simplifications).
# ---------------------------------------------------------------------------
def reference_forward(z, p):
    def lrelu(x):
        return jnp.where(x > 0, x, 0.2 * x)

    def mm(x, w):
        return jnp.dot(x.astype(jnp.bfloat16), w,
                       preferred_element_type=jnp.float32)

    def bn(x, g, b):
        mu = jnp.mean(x, axis=0, keepdims=True)
        var = jnp.mean((x - mu) ** 2, axis=0, keepdims=True)
        return (x - mu) / jnp.sqrt(var + BN_EPS) * g + b

    h = lrelu(mm(z, p["w1"]) + p["b1"])
    h = lrelu(bn(mm(h, p["w2"]) + p["b2"], p["g2"], p["be2"]))
    h = lrelu(bn(mm(h, p["w3"]) + p["b3"], p["g3"], p["be3"]))
    h = lrelu(bn(mm(h, p["w4"]) + p["b4"], p["g4"], p["be4"]))
    out = jnp.tanh(mm(h, p["w5"]) + p["b5"])
    return out.reshape(z.shape[0], CHANNELS, IMG_SIZE, IMG_SIZE)


if __name__ == "__main__":
    key = jax.random.PRNGKey(0)
    k_z, k_p = jax.random.split(key)

    z = jax.random.normal(k_z, (BATCH, LATENT_DIM), jnp.float32)
    params = init_params(k_p)

    img = jax.block_until_ready(generator_forward(z, params))
    assert img.shape == (BATCH, CHANNELS, IMG_SIZE, IMG_SIZE), img.shape
    assert img.dtype == jnp.float32

    ref = jax.block_until_ready(reference_forward(z, params))
    err = float(jnp.max(jnp.abs(img - ref)))
    assert err < 1e-2, f"mismatch vs reference: {err}"

    print("KERNEL_OK")
</pallas_src>

<mosaic_0001>
module attributes {stable_mosaic.version = 11 : i64} {
  func.func @_stem_kernel(%arg0: memref<8x32xf32, #tpu.memory_space<vmem>>, %arg1: memref<32x128xbf16, #tpu.memory_space<vmem>>, %arg2: memref<1x128xf32, #tpu.memory_space<vmem>>, %arg3: memref<128x256xbf16, #tpu.memory_space<vmem>>, %arg4: memref<1x256xf32, #tpu.memory_space<vmem>>, %arg5: memref<1x256xf32, #tpu.memory_space<vmem>>, %arg6: memref<256x512xbf16, #tpu.memory_space<vmem>>, %arg7: memref<1x512xf32, #tpu.memory_space<vmem>>, %arg8: memref<1x512xf32, #tpu.memory_space<vmem>>, %arg9: memref<512x1024xbf16, #tpu.memory_space<vmem>>, %arg10: memref<1x1024xf32, #tpu.memory_space<vmem>>, %arg11: memref<1x1024xf32, #tpu.memory_space<vmem>>, %arg12: memref<8x1024xbf16, #tpu.memory_space<vmem>>) attributes {dimension_semantics = [], scalar_prefetch = 0 : i64, scratch_operands = 0 : i64, tpu.core_type = #tpu.core_type<tc>} {
    %c0 = arith.constant 0 : index
    %c0_0 = arith.constant 0 : index
    %0 = vector.load %arg0[%c0, %c0_0] : memref<8x32xf32, #tpu.memory_space<vmem>>, vector<8x32xf32>
    %1 = arith.truncf %0 : vector<8x32xf32> to vector<8x32xbf16>
    %c0_1 = arith.constant 0 : index
    %c0_2 = arith.constant 0 : index
    %2 = vector.load %arg1[%c0_1, %c0_2] : memref<32x128xbf16, #tpu.memory_space<vmem>>, vector<32x128xbf16>
    %cst = arith.constant dense<0.000000e+00> : vector<8x128xf32>
    %3 = tpu.matmul %1, %2, %cst {dimension_numbers = #tpu.dot_dimension_numbers<[1], [0], [0], [1], [0, 0, 1, 1], [], []>} : vector<8x32xbf16>, vector<32x128xbf16>, vector<8x128xf32> -> vector<8x128xf32>
    %c0_3 = arith.constant 0 : index
    %c0_4 = arith.constant 0 : index
    %4 = vector.load %arg2[%c0_3, %c0_4] : memref<1x128xf32, #tpu.memory_space<vmem>>, vector<1x128xf32>
    %5 = vector.broadcast %4 : vector<1x128xf32> to vector<8x128xf32>
    %6 = arith.addf %3, %5 : vector<8x128xf32>
    %cst_5 = arith.constant 0.000000e+00 : f32
    %7 = vector.broadcast %cst_5 : f32 to vector<8x128xf32>
    %8 = arith.cmpf ogt, %6, %7 : vector<8x128xf32>
    %cst_6 = arith.constant 2.000000e-01 : f32
    %9 = vector.broadcast %cst_6 : f32 to vector<8x128xf32>
    %10 = arith.mulf %9, %6 : vector<8x128xf32>
    %11 = arith.select %8, %6, %10 : vector<8x128xi1>, vector<8x128xf32>
    %12 = arith.truncf %11 : vector<8x128xf32> to vector<8x128xbf16>
    %c0_7 = arith.constant 0 : index
    %c0_8 = arith.constant 0 : index
    %13 = vector.load %arg3[%c0_7, %c0_8] : memref<128x256xbf16, #tpu.memory_space<vmem>>, vector<128x256xbf16>
    %cst_9 = arith.constant dense<0.000000e+00> : vector<8x256xf32>
    %14 = tpu.matmul %12, %13, %cst_9 {dimension_numbers = #tpu.dot_dimension_numbers<[1], [0], [0], [1], [0, 0, 1, 1], [], []>} : vector<8x128xbf16>, vector<128x256xbf16>, vector<8x256xf32> -> vector<8x256xf32>
    %c0_10 = arith.constant 0 : index
    %c0_11 = arith.constant 0 : index
    %15 = vector.load %arg4[%c0_10, %c0_11] : memref<1x256xf32, #tpu.memory_space<vmem>>, vector<1x256xf32>
    %c0_12 = arith.constant 0 : index
    %c0_13 = arith.constant 0 : index
    %16 = vector.load %arg5[%c0_12, %c0_13] : memref<1x256xf32, #tpu.memory_space<vmem>>, vector<1x256xf32>
    %cst_14 = arith.constant dense<0.000000e+00> : vector<256xf32>
    %17 = vector.multi_reduction <add>, %14, %cst_14 [0] : vector<8x256xf32> to vector<256xf32>
    %18 = vector.shape_cast %17 : vector<256xf32> to vector<1x256xf32>
    %19 = arith.mulf %14, %14 : vector<8x256xf32>
    %cst_15 = arith.constant dense<0.000000e+00> : vector<256xf32>
    %20 = vector.multi_reduction <add>, %19, %cst_15 [0] : vector<8x256xf32> to vector<256xf32>
    %21 = vector.shape_cast %20 : vector<256xf32> to vector<1x256xf32>
    %cst_16 = arith.constant 1.250000e-01 : f32
    %22 = vector.broadcast %cst_16 : f32 to vector<1x256xf32>
    %23 = arith.mulf %18, %22 : vector<1x256xf32>
    %cst_17 = arith.constant 1.250000e-01 : f32
    %24 = vector.broadcast %cst_17 : f32 to vector<1x256xf32>
    %25 = arith.mulf %21, %24 : vector<1x256xf32>
    %26 = arith.mulf %23, %23 : vector<1x256xf32>
    %27 = arith.subf %25, %26 : vector<1x256xf32>
    %cst_18 = arith.constant 0.000000e+00 : f32
    %28 = vector.broadcast %cst_18 : f32 to vector<1x256xf32>
    %29 = arith.maximumf %27, %28 : vector<1x256xf32>
    %30 = vector.broadcast %23 : vector<1x256xf32> to vector<8x256xf32>
    %31 = arith.subf %14, %30 : vector<8x256xf32>
    %cst_19 = arith.constant 8.000000e-01 : f32
    %32 = vector.broadcast %cst_19 : f32 to vector<1x256xf32>
    %33 = arith.addf %29, %32 : vector<1x256xf32>
    %34 = math.rsqrt %33 : vector<1x256xf32>
    %35 = vector.broadcast %34 : vector<1x256xf32> to vector<8x256xf32>
    %36 = arith.mulf %31, %35 : vector<8x256xf32>
    %37 = vector.broadcast %15 : vector<1x256xf32> to vector<8x256xf32>
    %38 = arith.mulf %36, %37 : vector<8x256xf32>
    %39 = vector.broadcast %16 : vector<1x256xf32> to vector<8x256xf32>
    %40 = arith.addf %38, %39 : vector<8x256xf32>
    %cst_20 = arith.constant 0.000000e+00 : f32
    %41 = vector.broadcast %cst_20 : f32 to vector<8x256xf32>
    %42 = arith.cmpf ogt, %40, %41 : vector<8x256xf32>
    %cst_21 = arith.constant 2.000000e-01 : f32
    %43 = vector.broadcast %cst_21 : f32 to vector<8x256xf32>
    %44 = arith.mulf %43, %40 : vector<8x256xf32>
    %45 = arith.select %42, %40, %44 : vector<8x256xi1>, vector<8x256xf32>
    %46 = arith.truncf %45 : vector<8x256xf32> to vector<8x256xbf16>
    %c0_22 = arith.constant 0 : index
    %c0_23 = arith.constant 0 : index
    %47 = vector.load %arg6[%c0_22, %c0_23] : memref<256x512xbf16, #tpu.memory_space<vmem>>, vector<256x512xbf16>
    %cst_24 = arith.constant dense<0.000000e+00> : vector<8x512xf32>
    %48 = tpu.matmul %46, %47, %cst_24 {dimension_numbers = #tpu.dot_dimension_numbers<[1], [0], [0], [1], [0, 0, 1, 1], [], []>} : vector<8x256xbf16>, vector<256x512xbf16>, vector<8x512xf32> -> vector<8x512xf32>
    %c0_25 = arith.constant 0 : index
    %c0_26 = arith.constant 0 : index
    %49 = vector.load %arg7[%c0_25, %c0_26] : memref<1x512xf32, #tpu.memory_space<vmem>>, vector<1x512xf32>
    %c0_27 = arith.constant 0 : index
    %c0_28 = arith.constant 0 : index
    %50 = vector.load %arg8[%c0_27, %c0_28] : memref<1x512xf32, #tpu.memory_space<vmem>>, vector<1x512xf32>
    %cst_29 = arith.constant dense<0.000000e+00> : vector<512xf32>
    %51 = vector.multi_reduction <add>, %48, %cst_29 [0] : vector<8x512xf32> to vector<512xf32>
    %52 = vector.shape_cast %51 : vector<512xf32> to vector<1x512xf32>
    %53 = arith.mulf %48, %48 : vector<8x512xf32>
    %cst_30 = arith.constant dense<0.000000e+00> : vector<512xf32>
    %54 = vector.multi_reduction <add>, %53, %cst_30 [0] : vector<8x512xf32> to vector<512xf32>
    %55 = vector.shape_cast %54 : vector<512xf32> to vector<1x512xf32>
    %cst_31 = arith.constant 1.250000e-01 : f32
    %56 = vector.broadcast %cst_31 : f32 to vector<1x512xf32>
    %57 = arith.mulf %52, %56 : vector<1x512xf32>
    %cst_32 = arith.constant 1.250000e-01 : f32
    %58 = vector.broadcast %cst_32 : f32 to vector<1x512xf32>
    %59 = arith.mulf %55, %58 : vector<1x512xf32>
    %60 = arith.mulf %57, %57 : vector<1x512xf32>
    %61 = arith.subf %59, %60 : vector<1x512xf32>
    %cst_33 = arith.constant 0.000000e+00 : f32
    %62 = vector.broadcast %cst_33 : f32 to vector<1x512xf32>
    %63 = arith.maximumf %61, %62 : vector<1x512xf32>
    %64 = vector.broadcast %57 : vector<1x512xf32> to vector<8x512xf32>
    %65 = arith.subf %48, %64 : vector<8x512xf32>
    %cst_34 = arith.constant 8.000000e-01 : f32
    %66 = vector.broadcast %cst_34 : f32 to vector<1x512xf32>
    %67 = arith.addf %63, %66 : vector<1x512xf32>
    %68 = math.rsqrt %67 : vector<1x512xf32>
    %69 = vector.broadcast %68 : vector<1x512xf32> to vector<8x512xf32>
    %70 = arith.mulf %65, %69 : vector<8x512xf32>
    %71 = vector.broadcast %49 : vector<1x512xf32> to vector<8x512xf32>
    %72 = arith.mulf %70, %71 : vector<8x512xf32>
    %73 = vector.broadcast %50 : vector<1x512xf32> to vector<8x512xf32>
    %74 = arith.addf %72, %73 : vector<8x512xf32>
    %cst_35 = arith.constant 0.000000e+00 : f32
    %75 = vector.broadcast %cst_35 : f32 to vector<8x512xf32>
    %76 = arith.cmpf ogt, %74, %75 : vector<8x512xf32>
    %cst_36 = arith.constant 2.000000e-01 : f32
    %77 = vector.broadcast %cst_36 : f32 to vector<8x512xf32>
    %78 = arith.mulf %77, %74 : vector<8x512xf32>
    %79 = arith.select %76, %74, %78 : vector<8x512xi1>, vector<8x512xf32>
    %80 = arith.truncf %79 : vector<8x512xf32> to vector<8x512xbf16>
    %c0_37 = arith.constant 0 : index
    %c0_38 = arith.constant 0 : index
    %81 = vector.load %arg9[%c0_37, %c0_38] : memref<512x1024xbf16, #tpu.memory_space<vmem>>, vector<512x1024xbf16>
    %cst_39 = arith.constant dense<0.000000e+00> : vector<8x1024xf32>
    %82 = tpu.matmul %80, %81, %cst_39 {dimension_numbers = #tpu.dot_dimension_numbers<[1], [0], [0], [1], [0, 0, 1, 1], [], []>} : vector<8x512xbf16>, vector<512x1024xbf16>, vector<8x1024xf32> -> vector<8x1024xf32>
    %c0_40 = arith.constant 0 : index
    %c0_41 = arith.constant 0 : index
    %83 = vector.load %arg10[%c0_40, %c0_41] : memref<1x1024xf32, #tpu.memory_space<vmem>>, vector<1x1024xf32>
    %c0_42 = arith.constant 0 : index
    %c0_43 = arith.constant 0 : index
    %84 = vector.load %arg11[%c0_42, %c0_43] : memref<1x1024xf32, #tpu.memory_space<vmem>>, vector<1x1024xf32>
    %cst_44 = arith.constant dense<0.000000e+00> : vector<1024xf32>
    %85 = vector.multi_reduction <add>, %82, %cst_44 [0] : vector<8x1024xf32> to vector<1024xf32>
    %86 = vector.shape_cast %85 : vector<1024xf32> to vector<1x1024xf32>
    %87 = arith.mulf %82, %82 : vector<8x1024xf32>
    %cst_45 = arith.constant dense<0.000000e+00> : vector<1024xf32>
    %88 = vector.multi_reduction <add>, %87, %cst_45 [0] : vector<8x1024xf32> to vector<1024xf32>
    %89 = vector.shape_cast %88 : vector<1024xf32> to vector<1x1024xf32>
    %cst_46 = arith.constant 1.250000e-01 : f32
    %90 = vector.broadcast %cst_46 : f32 to vector<1x1024xf32>
    %91 = arith.mulf %86, %90 : vector<1x1024xf32>
    %cst_47 = arith.constant 1.250000e-01 : f32
    %92 = vector.broadcast %cst_47 : f32 to vector<1x1024xf32>
    %93 = arith.mulf %89, %92 : vector<1x1024xf32>
    %94 = arith.mulf %91, %91 : vector<1x1024xf32>
    %95 = arith.subf %93, %94 : vector<1x1024xf32>
    %cst_48 = arith.constant 0.000000e+00 : f32
    %96 = vector.broadcast %cst_48 : f32 to vector<1x1024xf32>
    %97 = arith.maximumf %95, %96 : vector<1x1024xf32>
    %98 = vector.broadcast %91 : vector<1x1024xf32> to vector<8x1024xf32>
    %99 = arith.subf %82, %98 : vector<8x1024xf32>
    %cst_49 = arith.constant 8.000000e-01 : f32
    %100 = vector.broadcast %cst_49 : f32 to vector<1x1024xf32>
    %101 = arith.addf %97, %100 : vector<1x1024xf32>
    %102 = math.rsqrt %101 : vector<1x1024xf32>
    %103 = vector.broadcast %102 : vector<1x1024xf32> to vector<8x1024xf32>
    %104 = arith.mulf %99, %103 : vector<8x1024xf32>
    %105 = vector.broadcast %83 : vector<1x1024xf32> to vector<8x1024xf32>
    %106 = arith.mulf %104, %105 : vector<8x1024xf32>
    %107 = vector.broadcast %84 : vector<1x1024xf32> to vector<8x1024xf32>
    %108 = arith.addf %106, %107 : vector<8x1024xf32>
    %cst_50 = arith.constant 0.000000e+00 : f32
    %109 = vector.broadcast %cst_50 : f32 to vector<8x1024xf32>
    %110 = arith.cmpf ogt, %108, %109 : vector<8x1024xf32>
    %cst_51 = arith.constant 2.000000e-01 : f32
    %111 = vector.broadcast %cst_51 : f32 to vector<8x1024xf32>
    %112 = arith.mulf %111, %108 : vector<8x1024xf32>
    %113 = arith.select %110, %108, %112 : vector<8x1024xi1>, vector<8x1024xf32>
    %114 = arith.truncf %113 : vector<8x1024xf32> to vector<8x1024xbf16>
    %c0_52 = arith.constant 0 : index
    %c0_53 = arith.constant 0 : index
    %115 = vector.load %arg12[%c0_52, %c0_53] : memref<8x1024xbf16, #tpu.memory_space<vmem>>, vector<8x1024xbf16>
    tpu.vector_store %arg12[%c0_52, %c0_53], %114 {strides = array<i32>} : memref<8x1024xbf16, #tpu.memory_space<vmem>>, vector<8x1024xbf16>,
    return
  }
}

</mosaic_0001>

<bundles_post_ra>
// kernel: tpu_custom_call.1
= control target key start
LH: loop header
LB: loop body
LE: loop exit
PB: predicated region body
PF: predicated region fallthrough
CT: control target
= control target key end

     0   :  { %17 = vsyncpa [#allocation3], 0  ;;  %s4402_s0 = inlined_call_operand.hbm [shape: f32[8,32], index: 0, kind: input, shape index: {}]   ;;  %s4403_s1 = inlined_call_operand.hbm [shape: bf16[32,128], index: 1, kind: input, shape index: {}]   ;;  %s4404_s2 = inlined_call_operand.hbm [shape: f32[1,128], index: 2, kind: input, shape index: {}]   ;;  %s4405_s3 = inlined_call_operand.hbm [shape: bf16[128,256], index: 3, kind: input, shape index: {}]   ;;  %s4406_s4 = inlined_call_operand.vmem [shape: f32[1,256], index: 4, kind: input, shape index: {}]   ;;  %s4407_s5 = inlined_call_operand.hbm [shape: f32[1,256], index: 5, kind: input, shape index: {}]   ;;  %s4408_s6 = inlined_call_operand.hbm [shape: bf16[256,512], index: 6, kind: input, shape index: {}]   ;;  %s4409_s7 = inlined_call_operand.vmem [shape: f32[1,512], index: 7, kind: input, shape index: {}]   ;;  %s4410_s8 = inlined_call_operand.vmem [shape: f32[1,512], index: 8, kind: input, shape index: {}]   ;;  %s4411_s9 = inlined_call_operand.hbm [shape: bf16[512,1024], index: 9, kind: input, shape index: {}]   ;;  %s4412_s10 = inlined_call_operand.vmem [shape: f32[1,1024], index: 10, kind: input, shape index: {}]   ;;  %s4413_s11 = inlined_call_operand.vmem [shape: f32[1,1024], index: 11, kind: input, shape index: {}]   ;;  %s4414_s12 = inlined_call_operand.hbm [shape: bf16[8,1024], index: 12, kind: output, shape index: {}]  }
   0x1   :  { %18 = vsyncpa [#allocation6], 0 }
   0x2   :  { %19 = vsyncpa [#allocation9], 0 }
   0x3   :  { %20 = vsyncpa [#allocation12], 0 }
   0x4   :  { %21 = vsyncpa [#allocation4], 0  ;;  %s3992_s21 = smov [#allocation5]   ;;  %s3806_s25 = scalar_lea.hbm %s4403_s1, 256 }
   0x5   :  { %s37_s22 = sshll.u32 %s3992_s21, 4  ;;  %p3807_p0 = scmp.ne.s32.totalorder %s4403_s1, %s3806_s25  ;;  %s38_s22 = int_to_ptr.vmem [resolvable:$true] %s37_s22 }
   0x6   :  { %p3810_p1 = scmp.lt.u32.totalorder %s3806_s25, %s4403_s1 }
   0x8   :  { %p3812_p2 = pnand %p3810_p1, %p3807_p0 }
   0xa   :  { %3815 = shalt.err (!%p3812_p2)
}
   0xb   :  { %s3816_s30 = scalar_lea.vmem %s38_s22, 256  ;;  %p3821_p4 = scmp.lt.s32.totalorder %s38_s22, %s38_s22 }
   0xc   :  { %p3817_p3 = scmp.ne.s32.totalorder %s38_s22, %s3816_s30  ;;  %p3822_p5 = scmp.lt.s32.totalorder %s3816_s30, %s3816_s30 }
   0xe   :  { %p3823_p6 = por %p3822_p5, %p3821_p4 }
  0x10   :  { %p3824_p7 = pnand %p3823_p6, %p3817_p3 }
  0x12   :  { %3827 = shalt.err (!%p3824_p7)
}
  0x13   :  { %s3993_s13 = smov 64   ;;  %s3994_s14 = smov 4  }
  0x14   :  { %43 = dma.hbm_to_vmem [thread:$0]  %s4403_s1, 256, %s38_s22, [#allocation6], %s3993_s13, %s3993_s13, %s3994_s14  }
  0x15   :  { %s3995_s17 = smov [#allocation8]   ;;  %s3828_s21 = scalar_lea.hbm %s4405_s3, 2048 }
  0x16   :  { %s59_s18 = sshll.u32 %s3995_s17, 4  ;;  %p3829_p8 = scmp.ne.s32.totalorder %s4405_s3, %s3828_s21  ;;  %s60_s18 = int_to_ptr.vmem [resolvable:$true] %s59_s18 }
  0x17   :  { %p3832_p9 = scmp.lt.u32.totalorder %s3828_s21, %s4405_s3 }
  0x19   :  { %p3834_p10 = pnand %p3832_p9, %p3829_p8 }
  0x1b   :  { %3837 = shalt.err (!%p3834_p10)
}
  0x1c   :  { %s3838_s27 = scalar_lea.vmem %s60_s18, 2048  ;;  %p3843_p12 = scmp.lt.s32.totalorder %s60_s18, %s60_s18 }
  0x1d   :  { %p3839_p11 = scmp.ne.s32.totalorder %s60_s18, %s3838_s27  ;;  %p3844_p13 = scmp.lt.s32.totalorder %s3838_s27, %s3838_s27 }
  0x1f   :  { %p3845_p0 = por %p3844_p13, %p3843_p12 }
  0x21   :  { %p3846_p1 = pnand %p3845_p0, %p3839_p11 }
  0x23   :  { %3849 = shalt.err (!%p3846_p1)
}
  0x24   :  { %s3996_s1 = smov 128   ;;  %s3997_s22 = smov 8  }
  0x25   :  { %65 = dma.hbm_to_vmem [thread:$0]  %s4405_s3, 2048, %s60_s18, [#allocation9], %s3996_s1, %s3996_s1, %s3997_s22  }
  0x26   :  { %s3998_s30 = smov [#allocation11]   ;;  %s3850_s16 = scalar_lea.hbm %s4408_s6, 8192 }
  0x27   :  { %s83_s13 = sshll.u32 %s3998_s30, 4  ;;  %p3851_p2 = scmp.ne.s32.totalorder %s4408_s6, %s3850_s16  ;;  %s84_s13 = int_to_ptr.vmem [resolvable:$true] %s83_s13 }
  0x28   :  { %p3854_p3 = scmp.lt.u32.totalorder %s3850_s16, %s4408_s6 }
  0x2a   :  { %p3856_p4 = pnand %p3854_p3, %p3851_p2 }
  0x2c   :  { %3859 = shalt.err (!%p3856_p4)
}
  0x2d   :  { %s3860_s23 = scalar_lea.vmem %s84_s13, 8192  ;;  %p3865_p6 = scmp.lt.s32.totalorder %s84_s13, %s84_s13 }
  0x2e   :  { %p3861_p5 = scmp.ne.s32.totalorder %s84_s13, %s3860_s23  ;;  %p3866_p7 = scmp.lt.s32.totalorder %s3860_s23, %s3860_s23 }
  0x30   :  { %p3867_p8 = por %p3866_p7, %p3865_p6 }
  0x32   :  { %p3868_p9 = pnand %p3867_p8, %p3861_p5 }
  0x34   :  { %3871 = shalt.err (!%p3868_p9)
}
  0x35   :  { %s3999_s3 = smov 256   ;;  %s4000_s18 = smov 16  }
  0x36   :  { %89 = dma.hbm_to_vmem [thread:$0]  %s4408_s6, 8192, %s84_s13, [#allocation12], %s3999_s3, %s3999_s3, %s4000_s18  }
  0x37   :  { %s4001_s26 = smov [#allocation2]   ;;  %s4002_s1 = smov [#allocation7]  }
  0x38   :  { %s28_s27 = sshll.u32 %s4001_s26, 4  ;;  %s50_s22 = sshll.u32 %s4002_s1, 4  ;;  %s29_s27 = int_to_ptr.vmem [resolvable:$true] %s28_s27  ;;  %s51_s22 = int_to_ptr.vmem [resolvable:$true] %s50_s22 }
  0x39   :  { %s3872_s30 = scalar_lea.hbm %s4402_s0, 128 }
  0x3a   :  { %p3873_p10 = scmp.ne.s32.totalorder %s4402_s0, %s3872_s30  ;;  %p3876_p11 = scmp.lt.u32.totalorder %s3872_s30, %s4402_s0 }
  0x3c   :  { %p3878_p12 = pnand %p3876_p11, %p3873_p10 }
  0x3e   :  { %3881 = shalt.err (!%p3878_p12)
}
  0x3f   :  { %s3882_s6 = scalar_lea.vmem %s29_s27, 128  ;;  %p3887_p0 = scmp.lt.s32.totalorder %s29_s27, %s29_s27 }
  0x40   :  { %p3883_p13 = scmp.ne.s32.totalorder %s29_s27, %s3882_s6  ;;  %p3888_p1 = scmp.lt.s32.totalorder %s3882_s6, %s3882_s6 }
  0x42   :  { %p3889_p2 = por %p3888_p1, %p3887_p0 }
  0x44   :  { %p3890_p3 = pnand %p3889_p2, %p3883_p13 }
  0x46   :  { %3893 = shalt.err (!%p3890_p3)
}
  0x47   :  { %31 = dma.hbm_to_vmem [thread:$0]  %s4402_s0, 128, %s29_s27, [#allocation3]  }
  0x48   :  { %s3894_s23 = scalar_lea.hbm %s4404_s2, 16 }
  0x49   :  { %p3895_p4 = scmp.ne.s32.totalorder %s4404_s2, %s3894_s23  ;;  %p3898_p5 = scmp.lt.u32.totalorder %s3894_s23, %s4404_s2 }
  0x4b   :  { %p3900_p6 = pnand %p3898_p5, %p3895_p4 }
  0x4d   :  { %3903 = shalt.err (!%p3900_p6)
}
  0x4e   :  { %s3904_s26 = scalar_lea.vmem %s51_s22, 16  ;;  %s3908_s1 = scalar_lea.vmem %s51_s22, 32 }
  0x4f   :  { %p3905_p7 = scmp.ne.s32.totalorder %s51_s22, %s3904_s26  ;;  %p3909_p8 = scmp.lt.s32.totalorder %s51_s22, %s51_s22 }
  0x50   :  { %p3910_p9 = scmp.lt.s32.totalorder %s3908_s1, %s3904_s26 }
  0x52   :  { %p3911_p10 = por %p3910_p9, %p3909_p8 }
  0x54   :  { %p3912_p11 = pnand %p3911_p10, %p3905_p7 }
  0x56   :  { %3915 = shalt.err (!%p3912_p11)
}
  0x57   :  { %53 = dma.hbm_to_vmem [thread:$0]  %s4404_s2, 16, %s51_s22, [#allocation6]  }
  0x58   :  { %s4003_s28 = smov [#allocation10]   ;;  %s4004_s30 = smov [#allocation13]  }
  0x59   :  { %s74_s29 = sshll.u32 %s4003_s28, 4  ;;  %s99_s14 = sshll.u32 %s4004_s30, 4  ;;  %s75_s29 = int_to_ptr.vmem [resolvable:$true] %s74_s29  ;;  %s100_s14 = int_to_ptr.vmem [resolvable:$true] %s99_s14 }
  0x5a   :  { %s3916_s17 = scalar_lea.hbm %s4407_s5, 32 }
  0x5b   :  { %p3917_p12 = scmp.ne.s32.totalorder %s4407_s5, %s3916_s17  ;;  %p3920_p13 = scmp.lt.u32.totalorder %s3916_s17, %s4407_s5 }
  0x5d   :  { %p3922_p0 = pnand %p3920_p13, %p3917_p12 }
  0x5f   :  { %3925 = shalt.err (!%p3922_p0)
}
  0x60   :  { %s3926_s2 = scalar_lea.vmem %s75_s29, 32  ;;  %p3931_p2 = scmp.lt.s32.totalorder %s75_s29, %s75_s29 }
  0x61   :  { %p3927_p1 = scmp.ne.s32.totalorder %s75_s29, %s3926_s2  ;;  %p3932_p3 = scmp.lt.s32.totalorder %s3926_s2, %s3926_s2 }
  0x63   :  { %p3933_p4 = por %p3932_p3, %p3931_p2 }
  0x65   :  { %p3934_p5 = pnand %p3933_p4, %p3927_p1 }
  0x67   :  { %3937 = shalt.err (!%p3934_p5)
}
  0x68   :  { %77 = dma.hbm_to_vmem [thread:$0]  %s4407_s5, 32, %s75_s29, [#allocation9]  }
  0x69   :  { %s3938_s18 = scalar_lea.hbm %s4411_s9, 32768 }
  0x6a   :  { %p3939_p6 = scmp.ne.s32.totalorder %s4411_s9, %s3938_s18  ;;  %p3942_p7 = scmp.lt.u32.totalorder %s3938_s18, %s4411_s9 }
  0x6c   :  { %p3944_p8 = pnand %p3942_p7, %p3939_p6 }
  0x6e   :  { %3947 = shalt.err (!%p3944_p8)
}
  0x6f   :  { %s3948_s0 = scalar_lea.vmem %s100_s14, 32768  ;;  %p3953_p10 = scmp.lt.s32.totalorder %s100_s14, %s100_s14 }
  0x70   :  { %p3949_p9 = scmp.ne.s32.totalorder %s100_s14, %s3948_s0  ;;  %p3954_p11 = scmp.lt.s32.totalorder %s3948_s0, %s3948_s0 }
  0x72   :  { %p3955_p12 = por %p3954_p11, %p3953_p10 }
  0x74   :  { %p3956_p13 = pnand %p3955_p12, %p3949_p9 }
  0x76   :  { %3959 = shalt.err (!%p3956_p13)
}
  0x77   :  { %s4005_s5 = smov 512   ;;  %s4006_s27 = smov 32  }
  0x78   :  { %105 = dma.hbm_to_vmem [thread:$0]  %s4411_s9, 32768, %s100_s14, [#allocation12], %s4005_s5, %s4005_s5, %s4006_s27  }
  0x79   :  { %3982 = dma.done.wait [#allocation3], 128  }
  0x7a   :  { %3983 = vsyncadd [#allocation3], 4294967168 }
  0x7b   :  { %3984 = dma.done.wait [#allocation6], 272  }
  0x7c   :  { %3985 = vsyncadd [#allocation6], 4294967024 }
  0x7d   :  { %3986 = dma.done.wait [#allocation9], 2080  }
  0x7e   :  { %3987 = vsyncadd [#allocation9], 4294965216 }
  0x7f   :  { %3988 = dma.done.wait [#allocation12], 40960  }
  0x80   :  { %3989 = vsyncadd [#allocation12], 4294926336  ;;  %v4007_v0 = vmov 0.0   ;;  %vm4008_vm0 = vmmov 0   ;;  %v3656_v1 = vld [vmem:[#allocation5] sm:$0xff]   ;;  %v3657_v2 = vld [vmem:[#allocation5 + $0x8] sm:$0xff]  }
  0x81   :  { %3613 = vmatprep.subr.bf16.mxu0 %v4007_v0  ;;  %3617 = vmatprep.mubr.msk.bf16.mxu0 %vm4008_vm0, %v4007_v0  ;;  %v132_v3 = vld [vmem:[#allocation2] sm:$0xff]  ;;  %v3661_v6 = vld [vmem:[#allocation8 + $0x14] ss:$8 sps:$4 sm:$0xff]   ;;  %vm157_vm1 = vcmask 261120   ;;  %v3663_v8 = vld [vmem:[#allocation8 + $0x10] ss:$8 sps:$4 sm:$0xff]  }
  0x82   :  { %3614 = vmatpush3.bf16.msra.mxu0 %v3656_v1  ;;  %v3658_v4 = vld [vmem:[#allocation8 + $0x4] ss:$8 sps:$4 sm:$0xff]   ;;  %v3660_v5 = vld [vmem:[#allocation8] ss:$8 sps:$4 sm:$0xff]   ;;  %v133_v7 = vpack.c.bf16 %v132_v3, %v132_v3  ;;  %v3667_v11 = vld [vmem:[#allocation8 + $0x34] ss:$8 sps:$4 sm:$0xff]  }
  0x83   :  { %3615 = vmatprep.subr.bf16.mxu0 %v4007_v0  ;;  %301 = vmatprep.subr.bf16.mxu1 %v3658_v4  ;;  %v3664_v9 = vld [vmem:[#allocation8 + $0x24] ss:$8 sps:$4 sm:$0xff]   ;;  %v3666_v10 = vld [vmem:[#allocation8 + $0x20] ss:$8 sps:$4 sm:$0xff]   ;;  %v3669_v12 = vld [vmem:[#allocation8 + $0x30] ss:$8 sps:$4 sm:$0xff]  }
  0x84   :  { %302 = vmatpush1.bf16.msra.mxu1 %v3660_v5  ;;  %v3670_v13 = vld [vmem:[#allocation8 + $0x44] ss:$8 sps:$4 sm:$0xff]   ;;  %v3672_v14 = vld [vmem:[#allocation8 + $0x40] ss:$8 sps:$4 sm:$0xff]   ;;  %v3673_v15 = vld [vmem:[#allocation8 + $0x54] ss:$8 sps:$4 sm:$0xff]  }
  0x85   :  { %303 = vmatprep.subr.bf16.mxu1 %v3661_v6  ;;  %v3675_v16 = vld [vmem:[#allocation8 + $0x50] ss:$8 sps:$4 sm:$0xff]   ;;  %v3676_v17 = vld [vmem:[#allocation8 + $0x64] ss:$8 sps:$4 sm:$0xff]   ;;  %v3678_v18 = vld [vmem:[#allocation8 + $0x60] ss:$8 sps:$4 sm:$0xff]  }
  0x86   :  { %3616 = vmatpush3.bf16.msra.mxu0 %v3657_v2  ;;  %v3679_v19 = vld [vmem:[#allocation8 + $0x74] ss:$8 sps:$4 sm:$0xff]   ;;  %v3681_v20 = vld [vmem:[#allocation8 + $0x70] ss:$8 sps:$4 sm:$0xff]   ;;  %v4009_v21 = vmov 0  }
  0x87   :  { %333 = vmatprep.mubr.bf16.mxu1 %v4009_v21  ;;  %v3682_v22 = vld [vmem:[#allocation11] ss:$16 sps:$4 sm:$0xff]   ;;  %v3684_v23 = vld [vmem:[#allocation11 + $0x4] ss:$16 sps:$4 sm:$0xff]   ;;  %v3687_v24 = vld [vmem:[#allocation11 + $0xc] ss:$16 sps:$4 sm:$0xff]  }
  0x88   :  { %304 = vmatpush1.bf16.msra.mxu1 %v3663_v8  ;;  %v3690_v25 = vld [vmem:[#allocation11 + $0x24] ss:$16 sps:$4 sm:$0xff]   ;;  %806 = vmatprep.subr.bf16.mxu0 %v3684_v23  ;;  %v3688_v26 = vld [vmem:[#allocation11 + $0x20] ss:$16 sps:$4 sm:$0xff]   ;;  %v3262_v33 = vld [vmem:[#allocation7] ss:$0 sm:$0xff] }
  0x89   :  { %3618 = vmatmul.mubr.msk.bf16.vlgmr.msra.gmra.mrb[0].mxu0 %vm157_vm1, %v133_v7  ;;  %305 = vmatprep.subr.bf16.mxu1 %v3664_v9  ;;  %v3696_v27 = vld [vmem:[#allocation11 + $0x44] ss:$16 sps:$4 sm:$0xff]   ;;  %v3694_v28 = vld [vmem:[#allocation11 + $0x40] ss:$16 sps:$4 sm:$0xff]   ;;  %v3685_v41 = vld [vmem:[#allocation11 + $0x8] ss:$16 sps:$4 sm:$0xff]  }
  0x8a   :  { %807 = vmatpush1.bf16.msra.mxu0 %v3682_v22  ;;  %v3702_v29 = vld [vmem:[#allocation11 + $0x64] ss:$16 sps:$4 sm:$0xff]   ;;  %v3700_v30 = vld [vmem:[#allocation11 + $0x60] ss:$16 sps:$4 sm:$0xff]   ;;  %v3693_v43 = vld [vmem:[#allocation11 + $0x2c] ss:$16 sps:$4 sm:$0xff]  }
  0x8b   :  { %808 = vmatprep.subr.bf16.mxu0 %v3690_v25  ;;  %v3708_v31 = vld [vmem:[#allocation11 + $0x84] ss:$16 sps:$4 sm:$0xff]   ;;  %v3706_v32 = vld [vmem:[#allocation11 + $0x80] ss:$16 sps:$4 sm:$0xff]   ;;  %v3691_v44 = vld [vmem:[#allocation11 + $0x28] ss:$16 sps:$4 sm:$0xff]  }
  0x8c   :  { %306 = vmatpush1.bf16.msra.mxu1 %v3666_v10  ;;  %v3699_v45 = vld [vmem:[#allocation11 + $0x4c] ss:$16 sps:$4 sm:$0xff]   ;;  %v3697_v46 = vld [vmem:[#allocation11 + $0x48] ss:$16 sps:$4 sm:$0xff]   ;;  %v3714_v51 = vld [vmem:[#allocation11 + $0xa4] ss:$16 sps:$4 sm:$0xff]  }
  0x8d   :  { %307 = vmatprep.subr.bf16.mxu1 %v3667_v11  ;;  %v3705_v47 = vld [vmem:[#allocation11 + $0x6c] ss:$16 sps:$4 sm:$0xff]   ;;  %v3703_v48 = vld [vmem:[#allocation11 + $0x68] ss:$16 sps:$4 sm:$0xff]   ;;  %v3712_v53 = vld [vmem:[#allocation11 + $0xa0] ss:$16 sps:$4 sm:$0xff]  }
  0x8e   :  { %809 = vmatpush1.bf16.msra.mxu0 %v3688_v26  ;;  %v3711_v49 = vld [vmem:[#allocation11 + $0x8c] ss:$16 sps:$4 sm:$0xff]   ;;  %v3709_v50 = vld [vmem:[#allocation11 + $0x88] ss:$16 sps:$4 sm:$0xff]   ;;  %v3720_v55 = vld [vmem:[#allocation11 + $0xc4] ss:$16 sps:$4 sm:$0xff]  }
  0x8f   :  { %810 = vmatprep.subr.bf16.mxu0 %v3696_v27  ;;  %v3717_v52 = vld [vmem:[#allocation11 + $0xac] ss:$16 sps:$4 sm:$0xff]   ;;  %v3715_v54 = vld [vmem:[#allocation11 + $0xa8] ss:$16 sps:$4 sm:$0xff]   ;;  %v3718_v57 = vld [vmem:[#allocation11 + $0xc0] ss:$16 sps:$4 sm:$0xff]  }
  0x90   :  { %308 = vmatpush1.bf16.msra.mxu1 %v3669_v12  ;;  %v3723_v56 = vld [vmem:[#allocation11 + $0xcc] ss:$16 sps:$4 sm:$0xff]   ;;  %v3721_v58 = vld [vmem:[#allocation11 + $0xc8] ss:$16 sps:$4 sm:$0xff]   ;;  %v3726_v59 = vld [vmem:[#allocation11 + $0xe4] ss:$16 sps:$4 sm:$0xff]  }
  0x91   :  { %309 = vmatprep.subr.bf16.mxu1 %v3670_v13  ;;  %v3729_v60 = vld [vmem:[#allocation11 + $0xec] ss:$16 sps:$4 sm:$0xff]   ;;  %v3724_v61 = vld [vmem:[#allocation11 + $0xe0] ss:$16 sps:$4 sm:$0xff]   ;;  %v3727_v62 = vld [vmem:[#allocation11 + $0xe8] ss:$16 sps:$4 sm:$0xff]  }
  0x92   :  { %811 = vmatpush1.bf16.msra.mxu0 %v3694_v28  ;;  %v3732_v63 = vld [vmem:[#allocation11 + $0x104] ss:$16 sps:$4 sm:$0xff]   ;;  %v3735_v0 = vld [vmem:[#allocation11 + $0x10c] ss:$16 sps:$4 sm:$0xff]   ;;  %v3730_v1 = vld [vmem:[#allocation11 + $0x100] ss:$16 sps:$4 sm:$0xff]  }
  0x93   :  { %812 = vmatprep.subr.bf16.mxu0 %v3702_v29  ;;  %v3733_v2 = vld [vmem:[#allocation11 + $0x108] ss:$16 sps:$4 sm:$0xff]   ;;  %v3738_v3 = vld [vmem:[#allocation11 + $0x124] ss:$16 sps:$4 sm:$0xff]   ;;  %v3741_v4 = vld [vmem:[#allocation11 + $0x12c] ss:$16 sps:$4 sm:$0xff]  }
  0x94   :  { %310 = vmatpush1.bf16.msra.mxu1 %v3672_v14  ;;  %v3736_v5 = vld [vmem:[#allocation11 + $0x120] ss:$16 sps:$4 sm:$0xff]   ;;  %v3739_v6 = vld [vmem:[#allocation11 + $0x128] ss:$16 sps:$4 sm:$0xff]   ;;  %v3744_v7 = vld [vmem:[#allocation11 + $0x144] ss:$16 sps:$4 sm:$0xff]  }
  0x95   :  { %311 = vmatprep.subr.bf16.mxu1 %v3673_v15  ;;  %v3747_v8 = vld [vmem:[#allocation11 + $0x14c] ss:$16 sps:$4 sm:$0xff]   ;;  %v3742_v9 = vld [vmem:[#allocation11 + $0x140] ss:$16 sps:$4 sm:$0xff]   ;;  %v3745_v10 = vld [vmem:[#allocation11 + $0x148] ss:$16 sps:$4 sm:$0xff]  }
  0x96   :  { %813 = vmatpush1.bf16.msra.mxu0 %v3700_v30  ;;  %v3750_v11 = vld [vmem:[#allocation11 + $0x164] ss:$16 sps:$4 sm:$0xff]   ;;  %v3753_v12 = vld [vmem:[#allocation11 + $0x16c] ss:$16 sps:$4 sm:$0xff]   ;;  %v3748_v13 = vld [vmem:[#allocation11 + $0x160] ss:$16 sps:$4 sm:$0xff]  }
  0x97   :  { %814 = vmatprep.subr.bf16.mxu0 %v3708_v31  ;;  %v3751_v14 = vld [vmem:[#allocation11 + $0x168] ss:$16 sps:$4 sm:$0xff]   ;;  %v3756_v15 = vld [vmem:[#allocation11 + $0x184] ss:$16 sps:$4 sm:$0xff]   ;;  %v3760_v21 = vld [vmem:[#allocation11 + $0x1a0] ss:$16 sps:$4 sm:$0xff]  }
  0x98   :  { %312 = vmatpush1.bf16.msra.mxu1 %v3675_v16  ;;  %v3759_v16 = vld [vmem:[#allocation11 + $0x18c] ss:$16 sps:$4 sm:$0xff]   ;;  %v3763_v22 = vld [vmem:[#allocation11 + $0x1a8] ss:$16 sps:$4 sm:$0xff]   ;;  %v3768_v23 = vld [vmem:[#allocation11 + $0x1c4] ss:$16 sps:$4 sm:$0xff]  }
  0x99   :  { %313 = vmatprep.subr.bf16.mxu1 %v3676_v17  ;;  %v3754_v17 = vld [vmem:[#allocation11 + $0x180] ss:$16 sps:$4 sm:$0xff]   ;;  %v3769_v26 = vld [vmem:[#allocation11 + $0x1c8] ss:$16 sps:$4 sm:$0xff]   ;;  %v3774_v27 = vld [vmem:[#allocation11 + $0x1e4] ss:$16 sps:$4 sm:$0xff]  }
  0x9a   :  { %815 = vmatpush1.bf16.msra.mxu0 %v3706_v32  ;;  %v3766_v25 = vld [vmem:[#allocation11 + $0x1c0] ss:$16 sps:$4 sm:$0xff]   ;;  %v3777_v28 = vld [vmem:[#allocation11 + $0x1ec] ss:$16 sps:$4 sm:$0xff]   ;;  %v3775_v30 = vld [vmem:[#allocation11 + $0x1e8] ss:$16 sps:$4 sm:$0xff]  }
  0x9b   :  { %816 = vmatprep.subr.bf16.mxu0 %v3714_v51  ;;  %v3772_v29 = vld [vmem:[#allocation11 + $0x1e0] ss:$16 sps:$4 sm:$0xff]  }
  0x9c   :  { %314 = vmatpush1.bf16.msra.mxu1 %v3678_v18  ;;  %v3757_v18 = vld [vmem:[#allocation11 + $0x188] ss:$16 sps:$4 sm:$0xff]   ;;  %v4160_v31 = vld [vmem:[#allocation13] sm:$0xff] }
  0x9d   :  { %315 = vmatprep.subr.bf16.mxu1 %v3679_v19  ;;  %v3762_v19 = vld [vmem:[#allocation11 + $0x1a4] ss:$16 sps:$4 sm:$0xff]  }
  0x9e   :  { %817 = vmatpush1.bf16.msra.mxu0 %v3712_v53  ;;  %v4162_v32 = vld [vmem:[#allocation13 + $0x20] sm:$0xff] }
  0x9f   :  { %818 = vmatprep.subr.bf16.mxu0 %v3720_v55 }
  0xa0   :  { %316 = vmatpush1.bf16.msra.mxu1 %v3681_v20  ;;  %v3765_v20 = vld [vmem:[#allocation11 + $0x1ac] ss:$16 sps:$4 sm:$0xff]  }
  0xa1   :  { %847 = vmatprep.subr.bf16.mxu1 %v3687_v24  ;;  %v3771_v24 = vld [vmem:[#allocation11 + $0x1cc] ss:$16 sps:$4 sm:$0xff]  }
  0xa2   :  { %819 = vmatpush1.bf16.msra.mxu0 %v3718_v57 }
  0xa3   :  { %820 = vmatprep.subr.bf16.mxu0 %v3726_v59 }
  0xa6   :  { %821 = vmatpush1.bf16.msra.mxu0 %v3724_v61 }
  0xa7   :  { %822 = vmatprep.subr.bf16.mxu0 %v3732_v63 }
  0xaa   :  { %823 = vmatpush1.bf16.msra.mxu0 %v3730_v1 }
  0xab   :  { %824 = vmatprep.subr.bf16.mxu0 %v3738_v3 }
  0xae   :  { %825 = vmatpush1.bf16.msra.mxu0 %v3736_v5 }
  0xaf   :  { %826 = vmatprep.subr.bf16.mxu0 %v3744_v7 }
  0xb2   :  { %827 = vmatpush1.bf16.msra.mxu0 %v3742_v9 }
  0xb3   :  { %828 = vmatprep.subr.bf16.mxu0 %v3750_v11 }
  0xb6   :  { %829 = vmatpush1.bf16.msra.mxu0 %v3748_v13 }
  0xb7   :  { %830 = vmatprep.subr.bf16.mxu0 %v3756_v15 }
  0xba   :  { %831 = vmatpush1.bf16.msra.mxu0 %v3754_v17 }
  0xbb   :  { %832 = vmatprep.subr.bf16.mxu0 %v3762_v19 }
  0xbe   :  { %833 = vmatpush1.bf16.msra.mxu0 %v3760_v21 }
  0xbf   :  { %834 = vmatprep.subr.bf16.mxu0 %v3768_v23 }
  0xc2   :  { %835 = vmatpush1.bf16.msra.mxu0 %v3766_v25 }
  0xc3   :  { %836 = vmatprep.subr.bf16.mxu0 %v3774_v27 }
  0xc6   :  { %837 = vmatpush1.bf16.msra.mxu0 %v3772_v29 }
 0x15c   :  { %v195_v34 = vpop.f32.mrb[0].mxu0 }
 0x15d   :  { %v196_v35 = vadd.f32 %v3262_v33, %v195_v34  ;;  %v3619_v36 = vpop.f32.mrb[1].mxu0  ;;  %v4164_v33 = vld [vmem:[#allocation13 + $0x8] sm:$0xff]  ;;  %v3346_v34 = vcombine.low %v4160_v31, %v4162_v32 }
 0x15e   :  { %v198_v37 = vpop.f32.mrb[2].mxu0  ;;  %v4170_v36 = vld [vmem:[#allocation13 + $0x28] sm:$0xff] }
 0x15f   :  { %vm201_vm2 = vcmp.gt.f32.partialorder %v196_v35, 0.0  ;;  %v202_v38 = vmul.f32 0.2, %v196_v35  ;;  %v3620_v39 = vpop.f32.mrb[3].mxu0  ;;  %v3348_v37 = vcombine.low %v4164_v33, %v4170_v36 }
 0x161   :  { %v203_v40 = vsel %vm201_vm2, %v196_v35, %v202_v38  ;;  %v3347_v35 = vcombine.high %v4160_v31, %v4162_v32  ;;  %v3349_v38 = vcombine.high %v4164_v33, %v4170_v36  ;;  %v1076_v33 = vld [vmem:[#allocation13 + $0x100] sm:$0xff]  ;;  %v1077_v36 = vld [vmem:[#allocation13 + $0x108] sm:$0xff] }
 0x162   :  { %v204_v42 = vpack.c.bf16 %v203_v40, %v203_v40 }
 0x163   :  { %2580 = vmatprep.subr.bf16.mxu0 %v3347_v35 }
 0x164   :  { %334 = vmatmul.mubr.bf16.vlgmr.msra.gmra.mrb[0].mxu1 %v204_v42 }
 0x165   :  { %848 = vmatpush1.bf16.msra.mxu1 %v3685_v41 }
 0x166   :  { %849 = vmatprep.subr.bf16.mxu1 %v3693_v43 }
 0x169   :  { %850 = vmatpush1.bf16.msra.mxu1 %v3691_v44 }
 0x16a   :  { %851 = vmatprep.subr.bf16.mxu1 %v3699_v45 }
 0x16d   :  { %852 = vmatpush1.bf16.msra.mxu1 %v3697_v46 }
 0x16e   :  { %853 = vmatprep.subr.bf16.mxu1 %v3705_v47 }
 0x171   :  { %854 = vmatpush1.bf16.msra.mxu1 %v3703_v48 }
 0x172   :  { %855 = vmatprep.subr.bf16.mxu1 %v3711_v49 }
 0x175   :  { %856 = vmatpush1.bf16.msra.mxu1 %v3709_v50 }
 0x176   :  { %857 = vmatprep.subr.bf16.mxu1 %v3717_v52 }
 0x179   :  { %858 = vmatpush1.bf16.msra.mxu1 %v3715_v54 }
 0x17a   :  { %859 = vmatprep.subr.bf16.mxu1 %v3723_v56 }
 0x17d   :  { %860 = vmatpush1.bf16.msra.mxu1 %v3721_v58 }
 0x17e   :  { %861 = vmatprep.subr.bf16.mxu1 %v3729_v60 }
 0x181   :  { %862 = vmatpush1.bf16.msra.mxu1 %v3727_v62 }
 0x182   :  { %863 = vmatprep.subr.bf16.mxu1 %v3735_v0 }
 0x185   :  { %864 = vmatpush1.bf16.msra.mxu1 %v3733_v2 }
 0x186   :  { %865 = vmatprep.subr.bf16.mxu1 %v3741_v4 }
 0x189   :  { %866 = vmatpush1.bf16.msra.mxu1 %v3739_v6 }
 0x18a   :  { %867 = vmatprep.subr.bf16.mxu1 %v3747_v8 }
 0x18d   :  { %868 = vmatpush1.bf16.msra.mxu1 %v3745_v10 }
 0x18e   :  { %869 = vmatprep.subr.bf16.mxu1 %v3753_v12 }
 0x191   :  { %870 = vmatpush1.bf16.msra.mxu1 %v3751_v14  ;;  %v389_v14 = vlaneseq }
 0x192   :  { %871 = vmatprep.subr.bf16.mxu1 %v3759_v16 }
 0x195   :  { %872 = vmatpush1.bf16.msra.mxu1 %v3757_v18  ;;  %v4176_v18 = vshrl.u32 %v389_v14, 7 }
 0x196   :  { %873 = vmatprep.subr.bf16.mxu1 %v3765_v20  ;;  %v342_v20 = vld [vmem:[%s4406_s4] sm:$0x3] }
 0x197   :  { %v4179_v19 = vsub.s32 0, %v4176_v18  ;;  %v4185_v21 = vsub.s32 1, %v4176_v18 }
 0x199   :  { %874 = vmatpush1.bf16.msra.mxu1 %v3763_v22  ;;  %v343_v22 = vld [vmem:[#allocation10] sm:$0x3]  ;;  %v396_v27 = vrot.slane %v342_v20, %v4185_v21 }
 0x19a   :  { %875 = vmatprep.subr.bf16.mxu1 %v3771_v24  ;;  %v392_v24 = vrot.slane %v342_v20, %v4179_v19 }
 0x19d   :  { %876 = vmatpush1.bf16.msra.mxu1 %v3769_v26 }
 0x19e   :  { %877 = vmatprep.subr.bf16.mxu1 %v3777_v28 }
 0x1a1   :  { %878 = vmatpush1.bf16.msra.mxu1 %v3775_v30  ;;  %v405_v30 = vrot.slane %v343_v22, %v4179_v19 }
 0x1a2   :  { %2662 = vmatprep.subr.bf16.mxu1 %v3349_v38  ;;  %v409_v38 = vrot.slane %v343_v22, %v4185_v21  ;;  %v1092_v22 = vld [vmem:[#allocation13 + $0x180] sm:$0xff] }
 0x237   :  { %v335_v39 = vpop.f32.mrb[0].mxu1 }
 0x238   :  { %v344_v40 = vrot.slane %v335_v39, 4  ;;  %v356_v41 = vmul.f32 %v335_v39, %v335_v39  ;;  %v337_v42 = vpop.f32.mrb[1].mxu1 }
 0x239   :  { %v350_v43 = vrot.slane %v337_v42, 4  ;;  %v357_v44 = vmul.f32 %v337_v42, %v337_v42  ;;  %v339_v45 = vpop.f32.mrb[2].mxu1 }
 0x23a   :  { %v345_v46 = vadd.f32 %v344_v40, %v335_v39  ;;  %v358_v47 = vrot.slane %v356_v41, 4  ;;  %v340_v48 = vpop.f32.mrb[3].mxu1 }
 0x23b   :  { %v351_v49 = vadd.f32 %v350_v43, %v337_v42  ;;  %v364_v50 = vrot.slane %v357_v44, 4  ;;  %v1053_v48 = vld [vmem:[#allocation13 + $0x48] sm:$0xff] }
 0x23c   :  { %v346_v51 = vrot.slane %v345_v46, 2  ;;  %v359_v52 = vadd.f32 %v358_v47, %v356_v41 }
 0x23d   :  { %v352_v53 = vrot.slane %v351_v49, 2  ;;  %v365_v54 = vadd.f32 %v364_v50, %v357_v44 }
 0x23e   :  { %v347_v55 = vadd.f32 %v346_v51, %v345_v46  ;;  %v360_v56 = vrot.slane %v359_v52, 2  ;;  %v1052_v46 = vld [vmem:[#allocation13 + $0x40] sm:$0xff] }
 0x23f   :  { %v353_v57 = vadd.f32 %v352_v53, %v351_v49  ;;  %v366_v58 = vrot.slane %v365_v54, 2  ;;  %v1057_v49 = vld [vmem:[#allocation13 + $0x68] sm:$0xff] }
 0x240   :  { %v348_v59 = vrot.slane %v347_v55, 1  ;;  %v361_v60 = vadd.f32 %v360_v56, %v359_v52  ;;  %v1064_v56 = vld [vmem:[#allocation13 + $0xa0] sm:$0xff] }
 0x241   :  { %v354_v61 = vrot.slane %v353_v57, 1  ;;  %v367_v62 = vadd.f32 %v366_v58, %v365_v54  ;;  %v3357_v54 = vcombine.high %v1053_v48, %v1057_v49  ;;  %v1065_v58 = vld [vmem:[#allocation13 + $0xa8] sm:$0xff] }
 0x242   :  { %v349_v63 = vadd.f32 %v348_v59, %v347_v55  ;;  %v362_v0 = vrot.slane %v361_v60, 1  ;;  %v1060_v55 = vld [vmem:[#allocation13 + $0x80] sm:$0xff] }
 0x243   :  { %v355_v1 = vadd.f32 %v354_v61, %v353_v57  ;;  %v368_v2 = vrot.slane %v367_v62, 1  ;;  %v1061_v57 = vld [vmem:[#allocation13 + $0x88] sm:$0xff]  ;;  %v3363_v61 = vcombine.high %v1060_v55, %v1064_v56 }
 0x244   :  { %v363_v3 = vadd.f32 %v362_v0, %v361_v60  ;;  %v370_v4 = vmul.f32 0.125, %v349_v63  ;;  %v3356_v60 = vcombine.low %v1053_v48, %v1057_v49  ;;  %v1068_v63 = vld [vmem:[#allocation13 + $0xc0] sm:$0xff]  ;;  %v1113_v48 = vld [vmem:[#allocation13 + $0x228] sm:$0xff] }
 0x245   :  { %v369_v5 = vadd.f32 %v368_v2, %v367_v62  ;;  %v371_v6 = vmul.f32 0.125, %v355_v1  ;;  %v3365_v62 = vcombine.high %v1061_v57, %v1065_v58  ;;  %v1072_v0 = vld [vmem:[#allocation13 + $0xe0] sm:$0xff]  ;;  %v1069_v1 = vld [vmem:[#allocation13 + $0xc8] sm:$0xff] }
 0x246   :  { %v372_v7 = vmul.f32 0.125, %v363_v3  ;;  %v374_v8 = vmul.f32 %v370_v4, %v370_v4  ;;  %v380_v23 = vsub.f32 %v335_v39, %v370_v4  ;;  %v1073_v2 = vld [vmem:[#allocation13 + $0xe8] sm:$0xff]  ;;  %v3362_v3 = vcombine.low %v1060_v55, %v1064_v56 }
 0x247   :  { %v373_v9 = vmul.f32 0.125, %v369_v5  ;;  %v375_v10 = vmul.f32 %v371_v6, %v371_v6  ;;  %v381_v26 = vsub.f32 %v337_v42, %v371_v6  ;;  %v1056_v42 = vld [vmem:[#allocation13 + $0x60] sm:$0xff]  ;;  %v3364_v4 = vcombine.low %v1061_v57, %v1065_v58  ;;  %v1121_v56 = vld [vmem:[#allocation13 + $0x268] sm:$0xff] }
 0x248   :  { %v376_v11 = vsub.f32 %v372_v7, %v374_v8  ;;  %v3355_v53 = vcombine.high %v1052_v46, %v1056_v42  ;;  %v3354_v59 = vcombine.low %v1052_v46, %v1056_v42  ;;  %v3371_v31 = vcombine.high %v1068_v63, %v1072_v0  ;;  %v1112_v46 = vld [vmem:[#allocation13 + $0x220] sm:$0xff] }
 0x249   :  { %v377_v12 = vsub.f32 %v373_v9, %v375_v10  ;;  %v3373_v32 = vcombine.high %v1069_v1, %v1073_v2  ;;  %v3370_v5 = vcombine.low %v1068_v63, %v1072_v0  ;;  %v3372_v6 = vcombine.low %v1069_v1, %v1073_v2  ;;  %v1129_v0 = vld [vmem:[#allocation13 + $0x2a8] sm:$0xff] }
 0x24a   :  { %v378_v13 = vmax.f32 %v376_v11, 0.0  ;;  %v1084_v11 = vld [vmem:[#allocation13 + $0x140] sm:$0xff] }
 0x24b   :  { %v379_v15 = vmax.f32 %v377_v12, 0.0  ;;  %v1088_v12 = vld [vmem:[#allocation13 + $0x160] sm:$0xff] }
 0x24c   :  { %v382_v16 = vadd.f32 0.8, %v378_v13  ;;  %v1085_v13 = vld [vmem:[#allocation13 + $0x148] sm:$0xff]  ;;  %v3387_v14 = vcombine.high %v1084_v11, %v1088_v12 }
 0x24d   :  { %v383_v17 = vadd.f32 0.8, %v379_v15  ;;  %v1089_v15 = vld [vmem:[#allocation13 + $0x168] sm:$0xff] }
 0x24e   :  { %3778 = vrsqrt.f32 %v382_v16  ;;  %v3386_v16 = vcombine.low %v1084_v11, %v1088_v12  ;;  %v3389_v20 = vcombine.high %v1085_v13, %v1089_v15 }
 0x24f   :  { %3780 = vrsqrt.f32 %v383_v17  ;;  %v3388_v17 = vcombine.low %v1085_v13, %v1089_v15  ;;  %v1152_v15 = vld [vmem:[#allocation13 + $0x360] sm:$0xff] }
 0x258   :  { %v3779_v25 = vpop.eup %3778 }
 0x259   :  { %v3781_v28 = vpop.eup %3780  ;;  %v386_v29 = vmul.f32 %v3779_v25, %v380_v23  ;;  %v1096_v23 = vld [vmem:[#allocation13 + $0x1a0] sm:$0xff] }
 0x25a   :  { %v387_v35 = vmul.f32 %v3781_v28, %v381_v26  ;;  %v3395_v25 = vcombine.high %v1092_v22, %v1096_v23  ;;  %v1097_v26 = vld [vmem:[#allocation13 + $0x1a8] sm:$0xff] }
 0x25b   :  { %v399_v40 = vmul.f32 %v392_v24, %v386_v29  ;;  %v1093_v24 = vld [vmem:[#allocation13 + $0x188] sm:$0xff] }
 0x25c   :  { %v400_v41 = vmul.f32 %v396_v27, %v387_v35  ;;  %v3394_v27 = vcombine.low %v1092_v22, %v1096_v23  ;;  %v3396_v28 = vcombine.low %v1093_v24, %v1097_v26  ;;  %v3397_v29 = vcombine.high %v1093_v24, %v1097_v26  ;;  %v1104_v35 = vld [vmem:[#allocation13 + $0x1e0] sm:$0xff] }
 0x25d   :  { %v412_v43 = vadd.f32 %v405_v30, %v399_v40  ;;  %v1100_v30 = vld [vmem:[#allocation13 + $0x1c0] sm:$0xff] }
 0x25e   :  { %v413_v44 = vadd.f32 %v409_v38, %v400_v41  ;;  %v1101_v38 = vld [vmem:[#allocation13 + $0x1c8] sm:$0xff]  ;;  %v3403_v40 = vcombine.high %v1100_v30, %v1104_v35  ;;  %v1160_v26 = vld [vmem:[#allocation13 + $0x3a0] sm:$0xff] }
 0x25f   :  { %vm414_vm3 = vcmp.gt.f32.partialorder %v412_v43, 0.0  ;;  %v416_v45 = vmul.f32 0.2, %v412_v43  ;;  %v1105_v41 = vld [vmem:[#allocation13 + $0x1e8] sm:$0xff] }
 0x260   :  { %vm415_vm4 = vcmp.gt.f32.partialorder %v413_v44, 0.0  ;;  %v417_v39 = vmul.f32 0.2, %v413_v44 }
 0x261   :  { %v418_v47 = vsel %vm414_vm3, %v412_v43, %v416_v45  ;;  %v3402_v43 = vcombine.low %v1100_v30, %v1104_v35  ;;  %v3405_v45 = vcombine.high %v1101_v38, %v1105_v41 }
 0x262   :  { %v419_v50 = vsel %vm415_vm4, %v413_v44, %v417_v39  ;;  %v420_v52 = vpack.c.bf16 %v418_v47, %v418_v47  ;;  %v3404_v44 = vcombine.low %v1101_v38, %v1105_v41  ;;  %v1108_v39 = vld [vmem:[#allocation13 + $0x200] sm:$0xff]  ;;  %v1109_v47 = vld [vmem:[#allocation13 + $0x208] sm:$0xff] }
 0x263   :  { %v421_v51 = vpack.c.bf16 %v419_v50, %v419_v50  ;;  %v3411_v42 = vcombine.high %v1108_v39, %v1112_v46  ;;  %v3410_v49 = vcombine.low %v1108_v39, %v1112_v46  ;;  %v3412_v50 = vcombine.low %v1109_v47, %v1113_v48  ;;  %v1168_v41 = vld [vmem:[#allocation13 + $0x3e0] sm:$0xff]  ;;  %v1169_v39 = vld [vmem:[#allocation13 + $0x3e8] sm:$0xff] }
 0x265   :  { %838 = vmatprep.mubr.bf16.mxu0 %v421_v51  ;;  %879 = vmatprep.mubr.bf16.mxu1 %v421_v51  ;;  %v3413_v51 = vcombine.high %v1109_v47, %v1113_v48  ;;  %v4199_v48 = vld [vmem:[#allocation13 + $0x420] sm:$0xff] }
 0x266   :  { %839 = vmatmul.mubr.bf16.vlgmr.msra.gmra.mrb[4].mxu0 %v420_v52  ;;  %880 = vmatmul.mubr.bf16.vlgmr.msra.gmra.mrb[4].mxu1 %v420_v52  ;;  %v1116_v52 = vld [vmem:[#allocation13 + $0x240] sm:$0xff] }
 0x267   :  { %2581 = vmatpush1.bf16.msra.mxu0 %v3346_v34  ;;  %2663 = vmatpush1.bf16.msra.mxu1 %v3348_v37  ;;  %v1080_v34 = vld [vmem:[#allocation13 + $0x120] sm:$0xff]  ;;  %v1081_v37 = vld [vmem:[#allocation13 + $0x128] sm:$0xff] }
 0x268   :  { %2582 = vmatprep.subr.bf16.mxu0 %v3355_v53  ;;  %2664 = vmatprep.subr.bf16.mxu1 %v3357_v54  ;;  %v3379_v7 = vcombine.high %v1076_v33, %v1080_v34  ;;  %v3381_v8 = vcombine.high %v1077_v36, %v1081_v37  ;;  %v3378_v9 = vcombine.low %v1076_v33, %v1080_v34  ;;  %v1120_v53 = vld [vmem:[#allocation13 + $0x260] sm:$0xff]  ;;  %v1117_v54 = vld [vmem:[#allocation13 + $0x248] sm:$0xff] }
 0x269   :  { %v3380_v10 = vcombine.low %v1077_v36, %v1081_v37  ;;  %v3419_v55 = vcombine.high %v1116_v52, %v1120_v53  ;;  %v3418_v57 = vcombine.low %v1116_v52, %v1120_v53  ;;  %v3420_v58 = vcombine.low %v1117_v54, %v1121_v56  ;;  %v1137_v34 = vld [vmem:[#allocation13 + $0x2e8] sm:$0xff] }
 0x26b   :  { %2583 = vmatpush1.bf16.msra.mxu0 %v3354_v59  ;;  %2665 = vmatpush1.bf16.msra.mxu1 %v3356_v60  ;;  %v3421_v59 = vcombine.high %v1117_v54, %v1121_v56  ;;  %v1124_v60 = vld [vmem:[#allocation13 + $0x280] sm:$0xff] }
 0x26c   :  { %2584 = vmatprep.subr.bf16.mxu0 %v3363_v61  ;;  %2666 = vmatprep.subr.bf16.mxu1 %v3365_v62  ;;  %v1128_v61 = vld [vmem:[#allocation13 + $0x2a0] sm:$0xff]  ;;  %v1125_v62 = vld [vmem:[#allocation13 + $0x288] sm:$0xff] }
 0x26d   :  { %v3427_v63 = vcombine.high %v1124_v60, %v1128_v61  ;;  %v3426_v1 = vcombine.low %v1124_v60, %v1128_v61  ;;  %v3428_v2 = vcombine.low %v1125_v62, %v1129_v0 }
 0x26f   :  { %2585 = vmatpush1.bf16.msra.mxu0 %v3362_v3  ;;  %2667 = vmatpush1.bf16.msra.mxu1 %v3364_v4  ;;  %v3429_v3 = vcombine.high %v1125_v62, %v1129_v0  ;;  %v1132_v4 = vld [vmem:[#allocation13 + $0x2c0] sm:$0xff] }
 0x270   :  { %2586 = vmatprep.subr.bf16.mxu0 %v3371_v31  ;;  %2668 = vmatprep.subr.bf16.mxu1 %v3373_v32  ;;  %v1136_v31 = vld [vmem:[#allocation13 + $0x2e0] sm:$0xff]  ;;  %v1133_v32 = vld [vmem:[#allocation13 + $0x2c8] sm:$0xff] }
 0x271   :  { %v3435_v33 = vcombine.high %v1132_v4, %v1136_v31  ;;  %v3434_v36 = vcombine.low %v1132_v4, %v1136_v31  ;;  %v3436_v37 = vcombine.low %v1133_v32, %v1137_v34 }
 0x273   :  { %2587 = vmatpush1.bf16.msra.mxu0 %v3370_v5  ;;  %2669 = vmatpush1.bf16.msra.mxu1 %v3372_v6  ;;  %v3437_v5 = vcombine.high %v1133_v32, %v1137_v34  ;;  %v1140_v6 = vld [vmem:[#allocation13 + $0x300] sm:$0xff] }
 0x274   :  { %2588 = vmatprep.subr.bf16.mxu0 %v3379_v7  ;;  %2670 = vmatprep.subr.bf16.mxu1 %v3381_v8  ;;  %v1144_v7 = vld [vmem:[#allocation13 + $0x320] sm:$0xff]  ;;  %v1141_v8 = vld [vmem:[#allocation13 + $0x308] sm:$0xff] }
 0x275   :  { %v3442_v11 = vcombine.low %v1140_v6, %v1144_v7 }
 0x277   :  { %2589 = vmatpush1.bf16.msra.mxu0 %v3378_v9  ;;  %2671 = vmatpush1.bf16.msra.mxu1 %v3380_v10  ;;  %v3443_v9 = vcombine.high %v1140_v6, %v1144_v7  ;;  %v1145_v10 = vld [vmem:[#allocation13 + $0x328] sm:$0xff] }
 0x278   :  { %2590 = vmatprep.subr.bf16.mxu0 %v3387_v14  ;;  %2672 = vmatprep.subr.bf16.mxu1 %v3389_v20  ;;  %v3444_v12 = vcombine.low %v1141_v8, %v1145_v10  ;;  %v3445_v13 = vcombine.high %v1141_v8, %v1145_v10  ;;  %v1148_v14 = vld [vmem:[#allocation13 + $0x340] sm:$0xff]  ;;  %v1153_v20 = vld [vmem:[#allocation13 + $0x368] sm:$0xff] }
 0x279   :  { %v3450_v22 = vcombine.low %v1148_v14, %v1152_v15 }
 0x27b   :  { %2591 = vmatpush1.bf16.msra.mxu0 %v3386_v16  ;;  %2673 = vmatpush1.bf16.msra.mxu1 %v3388_v17  ;;  %v1149_v16 = vld [vmem:[#allocation13 + $0x348] sm:$0xff]  ;;  %v3451_v17 = vcombine.high %v1148_v14, %v1152_v15 }
 0x27c   :  { %2592 = vmatprep.subr.bf16.mxu0 %v3395_v25  ;;  %2674 = vmatprep.subr.bf16.mxu1 %v3397_v29  ;;  %v3452_v23 = vcombine.low %v1149_v16, %v1153_v20  ;;  %v3453_v24 = vcombine.high %v1149_v16, %v1153_v20  ;;  %v1156_v25 = vld [vmem:[#allocation13 + $0x380] sm:$0xff]  ;;  %v1161_v29 = vld [vmem:[#allocation13 + $0x3a8] sm:$0xff] }
 0x27d   :  { %v3458_v30 = vcombine.low %v1156_v25, %v1160_v26 }
 0x27f   :  { %2593 = vmatpush1.bf16.msra.mxu0 %v3394_v27  ;;  %2675 = vmatpush1.bf16.msra.mxu1 %v3396_v28  ;;  %v1157_v27 = vld [vmem:[#allocation13 + $0x388] sm:$0xff]  ;;  %v3459_v28 = vcombine.high %v1156_v25, %v1160_v26 }
 0x280   :  { %2594 = vmatprep.subr.bf16.mxu0 %v3403_v40  ;;  %2676 = vmatprep.subr.bf16.mxu1 %v3405_v45  ;;  %v3460_v35 = vcombine.low %v1157_v27, %v1161_v29  ;;  %v3461_v38 = vcombine.high %v1157_v27, %v1161_v29  ;;  %v1164_v40 = vld [vmem:[#allocation13 + $0x3c0] sm:$0xff] }
 0x281   :  { %v3467_v45 = vcombine.high %v1164_v40, %v1168_v41 }
 0x283   :  { %2595 = vmatpush1.bf16.msra.mxu0 %v3402_v43  ;;  %2677 = vmatpush1.bf16.msra.mxu1 %v3404_v44  ;;  %v1165_v43 = vld [vmem:[#allocation13 + $0x3c8] sm:$0xff]  ;;  %v3466_v44 = vcombine.low %v1164_v40, %v1168_v41 }
 0x284   :  { %2596 = vmatprep.subr.bf16.mxu0 %v3411_v42  ;;  %2678 = vmatprep.subr.bf16.mxu1 %v3413_v51  ;;  %v3468_v46 = vcombine.low %v1165_v43, %v1169_v39  ;;  %v3469_v47 = vcombine.high %v1165_v43, %v1169_v39  ;;  %v4197_v42 = vld [vmem:[#allocation13 + $0x400] sm:$0xff]  ;;  %v4205_v51 = vld [vmem:[#allocation13 + $0x428] sm:$0xff] }
 0x285   :  { %v3474_v52 = vcombine.low %v4197_v42, %v4199_v48 }
 0x287   :  { %2597 = vmatpush1.bf16.msra.mxu0 %v3410_v49  ;;  %2679 = vmatpush1.bf16.msra.mxu1 %v3412_v50  ;;  %v4201_v49 = vld [vmem:[#allocation13 + $0x408] sm:$0xff]  ;;  %v3475_v50 = vcombine.high %v4197_v42, %v4199_v48 }
 0x288   :  { %2598 = vmatprep.subr.bf16.mxu0 %v3419_v55  ;;  %2680 = vmatprep.subr.bf16.mxu1 %v3421_v59  ;;  %v3476_v53 = vcombine.low %v4201_v49, %v4205_v51  ;;  %v3477_v54 = vcombine.high %v4201_v49, %v4205_v51 }
 0x28b   :  { %2599 = vmatpush1.bf16.msra.mxu0 %v3418_v57  ;;  %2681 = vmatpush1.bf16.msra.mxu1 %v3420_v58 }
 0x28c   :  { %2600 = vmatprep.subr.bf16.mxu0 %v3427_v63  ;;  %2682 = vmatprep.subr.bf16.mxu1 %v3429_v3 }
 0x28f   :  { %2601 = vmatpush1.bf16.msra.mxu0 %v3426_v1  ;;  %2683 = vmatpush1.bf16.msra.mxu1 %v3428_v2 }
 0x290   :  { %2602 = vmatprep.subr.bf16.mxu0 %v3435_v33  ;;  %2684 = vmatprep.subr.bf16.mxu1 %v3437_v5 }
 0x293   :  { %2603 = vmatpush1.bf16.msra.mxu0 %v3434_v36  ;;  %2685 = vmatpush1.bf16.msra.mxu1 %v3436_v37 }
 0x294   :  { %2604 = vmatprep.subr.bf16.mxu0 %v3443_v9  ;;  %2686 = vmatprep.subr.bf16.mxu1 %v3445_v13 }
 0x297   :  { %2605 = vmatpush1.bf16.msra.mxu0 %v3442_v11  ;;  %2687 = vmatpush1.bf16.msra.mxu1 %v3444_v12 }
 0x298   :  { %2606 = vmatprep.subr.bf16.mxu0 %v3451_v17  ;;  %2688 = vmatprep.subr.bf16.mxu1 %v3453_v24 }
 0x29b   :  { %2607 = vmatpush1.bf16.msra.mxu0 %v3450_v22  ;;  %2689 = vmatpush1.bf16.msra.mxu1 %v3452_v23 }
 0x29c   :  { %2608 = vmatprep.subr.bf16.mxu0 %v3459_v28  ;;  %2690 = vmatprep.subr.bf16.mxu1 %v3461_v38 }
 0x29f   :  { %2609 = vmatpush1.bf16.msra.mxu0 %v3458_v30  ;;  %2691 = vmatpush1.bf16.msra.mxu1 %v3460_v35 }
 0x2a0   :  { %2610 = vmatprep.subr.bf16.mxu0 %v3467_v45  ;;  %2692 = vmatprep.subr.bf16.mxu1 %v3469_v47 }
 0x2a3   :  { %2611 = vmatpush1.bf16.msra.mxu0 %v3466_v44  ;;  %2693 = vmatpush1.bf16.msra.mxu1 %v3468_v46 }
 0x2a4   :  { %2621 = vmatprep.subr.bf16.mxu0 %v3475_v50  ;;  %2703 = vmatprep.subr.bf16.mxu1 %v3477_v54 }
 0x339   :  { %v4213_v55 = vpop.f32.mrb[4].mxu0  ;;  %v4215_v56 = vpop.f32.mrb[4].mxu1 }
 0x33a   :  { %v890_v57 = vrot.slane %v4213_v55, 4  ;;  %v914_v58 = vmul.f32 %v4213_v55, %v4213_v55  ;;  %v902_v59 = vrot.slane %v4215_v56, 4  ;;  %v916_v60 = vmul.f32 %v4215_v56, %v4215_v56  ;;  %v4223_v61 = vpop.f32.mrb[5].mxu0  ;;  %v4225_v62 = vpop.f32.mrb[5].mxu1 }
 0x33b   :  { %v896_v63 = vrot.slane %v4223_v61, 4  ;;  %v915_v0 = vmul.f32 %v4223_v61, %v4223_v61  ;;  %v908_v1 = vrot.slane %v4225_v62, 4  ;;  %v917_v2 = vmul.f32 %v4225_v62, %v4225_v62  ;;  %v844_v3 = vpop.f32.mrb[6].mxu0  ;;  %v885_v4 = vpop.f32.mrb[6].mxu1 }
 0x33c   :  { %v891_v31 = vadd.f32 %v890_v57, %v4213_v55  ;;  %v918_v32 = vrot.slane %v914_v58, 4  ;;  %v903_v33 = vadd.f32 %v902_v59, %v4215_v56  ;;  %v930_v34 = vrot.slane %v916_v60, 4  ;;  %v845_v36 = vpop.f32.mrb[7].mxu0  ;;  %v886_v37 = vpop.f32.mrb[7].mxu1 }
 0x33d   :  { %v897_v5 = vadd.f32 %v896_v63, %v4223_v61  ;;  %v924_v6 = vrot.slane %v915_v0, 4  ;;  %v909_v7 = vadd.f32 %v908_v1, %v4225_v62  ;;  %v936_v8 = vrot.slane %v917_v2, 4 }
 0x33e   :  { %v892_v9 = vrot.slane %v891_v31, 2  ;;  %v919_v10 = vadd.f32 %v918_v32, %v914_v58  ;;  %v904_v11 = vrot.slane %v903_v33, 2  ;;  %v931_v12 = vadd.f32 %v930_v34, %v916_v60 }
 0x33f   :  { %v898_v13 = vrot.slane %v897_v5, 2  ;;  %v925_v14 = vadd.f32 %v924_v6, %v915_v0  ;;  %v910_v15 = vrot.slane %v909_v7, 2  ;;  %v937_v16 = vadd.f32 %v936_v8, %v917_v2 }
 0x340   :  { %v893_v17 = vadd.f32 %v892_v9, %v891_v31  ;;  %v920_v20 = vrot.slane %v919_v10, 2  ;;  %v905_v22 = vadd.f32 %v904_v11, %v903_v33  ;;  %v932_v23 = vrot.slane %v931_v12, 2 }
 0x341   :  { %v899_v24 = vadd.f32 %v898_v13, %v897_v5  ;;  %v926_v25 = vrot.slane %v925_v14, 2  ;;  %v911_v26 = vadd.f32 %v910_v15, %v909_v7  ;;  %v938_v27 = vrot.slane %v937_v16, 2 }
 0x342   :  { %v894_v28 = vrot.slane %v893_v17, 1  ;;  %v921_v29 = vadd.f32 %v920_v20, %v919_v10  ;;  %v906_v30 = vrot.slane %v905_v22, 1  ;;  %v933_v35 = vadd.f32 %v932_v23, %v931_v12  ;;  %v888_v20 = vld [vmem:[%s4409_s7] sm:$0xf] }
 0x343   :  { %v900_v38 = vrot.slane %v899_v24, 1  ;;  %v927_v40 = vadd.f32 %v926_v25, %v925_v14  ;;  %v912_v41 = vrot.slane %v911_v26, 1  ;;  %v939_v43 = vadd.f32 %v938_v27, %v937_v16  ;;  %v889_v23 = vld [vmem:[%s4410_s8] sm:$0xf] }
 0x344   :  { %v895_v44 = vadd.f32 %v894_v28, %v893_v17  ;;  %v922_v45 = vrot.slane %v921_v29, 1  ;;  %v907_v39 = vadd.f32 %v906_v30, %v905_v22  ;;  %v934_v46 = vrot.slane %v933_v35, 1 }
 0x345   :  { %v901_v47 = vadd.f32 %v900_v38, %v899_v24  ;;  %v928_v50 = vrot.slane %v927_v40, 1  ;;  %v913_v54 = vadd.f32 %v912_v41, %v911_v26  ;;  %v940_v57 = vrot.slane %v939_v43, 1 }
 0x346   :  { %v923_v58 = vadd.f32 %v922_v45, %v921_v29  ;;  %v942_v59 = vmul.f32 0.125, %v895_v44  ;;  %v935_v60 = vadd.f32 %v934_v46, %v933_v35  ;;  %v944_v63 = vmul.f32 0.125, %v907_v39 }
 0x347   :  { %v929_v0 = vadd.f32 %v928_v50, %v927_v40  ;;  %v943_v1 = vmul.f32 0.125, %v901_v47  ;;  %v941_v2 = vadd.f32 %v940_v57, %v939_v43  ;;  %v945_v3 = vmul.f32 0.125, %v913_v54 }
 0x348   :  { %v946_v4 = vmul.f32 0.125, %v923_v58  ;;  %v950_v31 = vmul.f32 %v942_v59, %v942_v59  ;;  %v948_v32 = vmul.f32 0.125, %v935_v60  ;;  %v952_v33 = vmul.f32 %v944_v63, %v944_v63 }
 0x349   :  { %v947_v34 = vmul.f32 0.125, %v929_v0  ;;  %v951_v36 = vmul.f32 %v943_v1, %v943_v1  ;;  %v949_v5 = vmul.f32 0.125, %v941_v2  ;;  %v953_v6 = vmul.f32 %v945_v3, %v945_v3 }
 0x34a   :  { %v954_v37 = vsub.f32 %v946_v4, %v950_v31  ;;  %v956_v7 = vsub.f32 %v948_v32, %v952_v33  ;;  %v4241_v22 = vsub.s32 2, %v4176_v18  ;;  %v4247_v24 = vsub.s32 3, %v4176_v18  ;;  %v1180_v31 = vld [vmem:[#allocation13 + $0x440] sm:$0xff] }
 0x34b   :  { %v955_v8 = vsub.f32 %v947_v34, %v951_v36  ;;  %v957_v10 = vsub.f32 %v949_v5, %v953_v6  ;;  %v962_v25 = vsub.f32 %v4213_v55, %v942_v59  ;;  %v982_v26 = vrot.slane %v888_v20, %v4179_v19  ;;  %v1184_v33 = vld [vmem:[#allocation13 + $0x460] sm:$0xff]  ;;  %v1181_v34 = vld [vmem:[#allocation13 + $0x448] sm:$0xff] }
 0x34c   :  { %v958_v9 = vmax.f32 %v954_v37, 0.0  ;;  %v960_v11 = vmax.f32 %v956_v7, 0.0  ;;  %v964_v28 = vsub.f32 %v4215_v56, %v944_v63  ;;  %v990_v29 = vrot.slane %v888_v20, %v4241_v22  ;;  %v1185_v36 = vld [vmem:[#allocation13 + $0x468] sm:$0xff]  ;;  %v1188_v7 = vld [vmem:[#allocation13 + $0x480] sm:$0xff] }
 0x34d   :  { %v959_v12 = vmax.f32 %v955_v8, 0.0  ;;  %v961_v14 = vmax.f32 %v957_v10, 0.0  ;;  %v1007_v38 = vrot.slane %v889_v23, %v4179_v19  ;;  %v963_v40 = vsub.f32 %v4223_v61, %v943_v1  ;;  %v1192_v10 = vld [vmem:[#allocation13 + $0x4a0] sm:$0xff] }
 0x34e   :  { %v966_v13 = vadd.f32 0.8, %v958_v9  ;;  %v968_v15 = vadd.f32 0.8, %v960_v11  ;;  %v986_v41 = vrot.slane %v888_v20, %v4185_v21  ;;  %v1015_v45 = vrot.slane %v889_v23, %v4241_v22  ;;  %v1189_v11 = vld [vmem:[#allocation13 + $0x488] sm:$0xff] }
 0x34f   :  { %v967_v16 = vadd.f32 0.8, %v959_v12  ;;  %v969_v17 = vadd.f32 0.8, %v961_v14  ;;  %v965_v55 = vsub.f32 %v4225_v62, %v945_v3  ;;  %v994_v39 = vrot.slane %v888_v20, %v4247_v24  ;;  %v1193_v12 = vld [vmem:[#allocation13 + $0x4a8] sm:$0xff]  ;;  %v1196_v20 = vld [vmem:[#allocation13 + $0x4c0] sm:$0xff] }
 0x350   :  { %3782 = vrsqrt.f32 %v966_v13  ;;  %v1011_v50 = vrot.slane %v889_v23, %v4185_v21  ;;  %v1019_v58 = vrot.slane %v889_v23, %v4247_v24  ;;  %v3483_v8 = vcombine.high %v1180_v31, %v1184_v33  ;;  %v1200_v23 = vld [vmem:[#allocation13 + $0x4e0] sm:$0xff] }
 0x351   :  { %3784 = vrsqrt.f32 %v968_v15  ;;  %v3485_v9 = vcombine.high %v1181_v34, %v1185_v36  ;;  %v3482_v14 = vcombine.low %v1180_v31, %v1184_v33  ;;  %v3484_v15 = vcombine.low %v1181_v34, %v1185_v36  ;;  %v1240_v33 = vld [vmem:[#allocation13 + $0x620] sm:$0xff]  ;;  %v1237_v34 = vld [vmem:[#allocation13 + $0x608] sm:$0xff] }
 0x352   :  { %3786 = vrsqrt.f32 %v967_v16  ;;  %v3491_v16 = vcombine.high %v1188_v7, %v1192_v10  ;;  %v3490_v42 = vcombine.low %v1188_v7, %v1192_v10  ;;  %v3492_v48 = vcombine.low %v1189_v11, %v1193_v12  ;;  %v1241_v36 = vld [vmem:[#allocation13 + $0x628] sm:$0xff]  ;;  %v1244_v10 = vld [vmem:[#allocation13 + $0x640] sm:$0xff] }
 0x353   :  { %3788 = vrsqrt.f32 %v969_v17  ;;  %v3493_v17 = vcombine.high %v1189_v11, %v1193_v12  ;;  %v3499_v49 = vcombine.high %v1196_v20, %v1200_v23  ;;  %v1248_v11 = vld [vmem:[#allocation13 + $0x660] sm:$0xff]  ;;  %v1245_v12 = vld [vmem:[#allocation13 + $0x648] sm:$0xff] }
 0x35a   :  { %v3783_v27 = vpop.eup %3782 }
 0x35b   :  { %v3785_v30 = vpop.eup %3784  ;;  %v974_v35 = vmul.f32 %v3783_v27, %v962_v25  ;;  %v1197_v25 = vld [vmem:[#allocation13 + $0x4c8] sm:$0xff] }
 0x35c   :  { %v3787_v43 = vpop.eup %3786  ;;  %v976_v44 = vmul.f32 %v3785_v30, %v964_v28  ;;  %v1205_v27 = vld [vmem:[#allocation13 + $0x508] sm:$0xff] }
 0x35d   :  { %v3789_v46 = vpop.eup %3788  ;;  %v999_v56 = vmul.f32 %v982_v26, %v974_v35  ;;  %v975_v47 = vmul.f32 %v3787_v43, %v963_v40  ;;  %v1201_v26 = vld [vmem:[#allocation13 + $0x4e8] sm:$0xff]  ;;  %v1212_v40 = vld [vmem:[#allocation13 + $0x540] sm:$0xff] }
 0x35e   :  { %v1001_v54 = vmul.f32 %v990_v29, %v976_v44  ;;  %v977_v57 = vmul.f32 %v3789_v46, %v965_v55  ;;  %v3501_v51 = vcombine.high %v1197_v25, %v1201_v26  ;;  %v1209_v28 = vld [vmem:[#allocation13 + $0x528] sm:$0xff]  ;;  %v3498_v29 = vcombine.low %v1196_v20, %v1200_v23  ;;  %v1252_v23 = vld [vmem:[#allocation13 + $0x680] sm:$0xff] }
 0x35f   :  { %v1024_v61 = vadd.f32 %v1007_v38, %v999_v56  ;;  %v1000_v59 = vmul.f32 %v986_v41, %v975_v47  ;;  %v3500_v30 = vcombine.low %v1197_v25, %v1201_v26  ;;  %v3509_v38 = vcombine.high %v1205_v27, %v1209_v28  ;;  %v1216_v41 = vld [vmem:[#allocation13 + $0x560] sm:$0xff]  ;;  %v1213_v43 = vld [vmem:[#allocation13 + $0x548] sm:$0xff] }
 0x360   :  { %v4261_v60 = vadd.f32 %v1015_v45, %v1001_v54  ;;  %v1002_v63 = vmul.f32 %v994_v39, %v977_v57  ;;  %v1217_v44 = vld [vmem:[#allocation13 + $0x568] sm:$0xff]  ;;  %v3508_v55 = vcombine.low %v1205_v27, %v1209_v28  ;;  %v3515_v39 = vcombine.high %v1212_v40, %v1216_v41  ;;  %v1220_v56 = vld [vmem:[#allocation13 + $0x580] sm:$0xff] }
 0x361   :  { %v1025_v0 = vadd.f32 %v1011_v50, %v1000_v59  ;;  %vm1028_vm5 = vcmp.gt.f32.partialorder %v1024_v61, 0.0  ;;  %v1032_v1 = vmul.f32 0.2, %v1024_v61  ;;  %v3517_v46 = vcombine.high %v1213_v43, %v1217_v44  ;;  %v1224_v47 = vld [vmem:[#allocation13 + $0x5a0] sm:$0xff]  ;;  %v1221_v50 = vld [vmem:[#allocation13 + $0x588] sm:$0xff] }
 0x362   :  { %v1027_v62 = vadd.f32 %v1019_v58, %v1002_v63  ;;  %v1225_v54 = vld [vmem:[#allocation13 + $0x5a8] sm:$0xff]  ;;  %v3514_v57 = vcombine.low %v1212_v40, %v1216_v41  ;;  %v3516_v58 = vcombine.low %v1213_v43, %v1217_v44  ;;  %v1228_v63 = vld [vmem:[#allocation13 + $0x5c0] sm:$0xff]  ;;  %vm1030_vm8 = vcmp.gt.f32.partialorder %v4261_v60, 0.0 }
 0x363   :  { %vm1029_vm6 = vcmp.gt.f32.partialorder %v1025_v0, 0.0  ;;  %v1033_v2 = vmul.f32 0.2, %v1025_v0  ;;  %v1036_v3 = vsel %vm1028_vm5, %v1024_v61, %v1032_v1  ;;  %v3523_v61 = vcombine.high %v1220_v56, %v1224_v47  ;;  %v1229_v1 = vld [vmem:[#allocation13 + $0x5c8] sm:$0xff]  ;;  %v1256_v25 = vld [vmem:[#allocation13 + $0x6a0] sm:$0xff] }
 0x364   :  { %vm1031_vm7 = vcmp.gt.f32.partialorder %v1027_v62, 0.0  ;;  %v1035_v4 = vmul.f32 0.2, %v1027_v62  ;;  %v4265_v6 = vpack.c.bf16 %v1036_v3, %v1036_v3  ;;  %v3525_v59 = vcombine.high %v1221_v50, %v1225_v54  ;;  %v1253_v26 = vld [vmem:[#allocation13 + $0x688] sm:$0xff]  ;;  %v1264_v27 = vld [vmem:[#allocation13 + $0x6e0] sm:$0xff] }
 0x365   :  { %v1037_v32 = vsel %vm1029_vm6, %v1025_v0, %v1033_v2  ;;  %v1232_v0 = vld [vmem:[#allocation13 + $0x5e0] sm:$0xff]  ;;  %v3522_v2 = vcombine.low %v1220_v56, %v1224_v47  ;;  %v3524_v3 = vcombine.low %v1221_v50, %v1225_v54  ;;  %v1261_v28 = vld [vmem:[#allocation13 + $0x6c8] sm:$0xff] }
 0x366   :  { %v4263_v37 = vpack.c.bf16 %v1037_v32, %v1037_v32  ;;  %v1039_v5 = vsel %vm1031_vm7, %v1027_v62, %v1035_v4  ;;  %v1233_v62 = vld [vmem:[#allocation13 + $0x5e8] sm:$0xff]  ;;  %v3531_v4 = vcombine.high %v1228_v63, %v1232_v0  ;;  %v1236_v32 = vld [vmem:[#allocation13 + $0x600] sm:$0xff] }
 0x367   :  { %v4271_v13 = vpack.c.bf16 %v1039_v5, %v1039_v5  ;;  %v3533_v31 = vcombine.high %v1229_v1, %v1233_v62  ;;  %v3530_v5 = vcombine.low %v1228_v63, %v1232_v0  ;;  %v3532_v7 = vcombine.low %v1229_v1, %v1233_v62  ;;  %v1268_v41 = vld [vmem:[#allocation13 + $0x700] sm:$0xff]  ;;  %v1269_v44 = vld [vmem:[#allocation13 + $0x708] sm:$0xff] }
 0x368   :  { %2612 = vmatprep.mubr.bf16.mxu0 %v4263_v37  ;;  %2694 = vmatprep.mubr.bf16.mxu1 %v4263_v37  ;;  %v1272_v43 = vld [vmem:[#allocation13 + $0x720] sm:$0xff]  ;;  %v1277_v54 = vld [vmem:[#allocation13 + $0x748] sm:$0xff] }
 0x369   :  { %2613 = vmatmul.mubr.bf16.vlgmr.msra.gmra.mrb[8].mxu0 %v4265_v6  ;;  %2695 = vmatmul.mubr.bf16.vlgmr.msra.gmra.mrb[8].mxu1 %v4265_v6  ;;  %v1276_v47 = vld [vmem:[#allocation13 + $0x740] sm:$0xff]  ;;  %v1285_v62 = vld [vmem:[#allocation13 + $0x788] sm:$0xff] }
 0x36a   :  { %2622 = vmatpush1.bf16.msra.mxu0 %v3474_v52  ;;  %2704 = vmatpush1.bf16.msra.mxu1 %v3476_v53  ;;  %v1204_v52 = vld [vmem:[#allocation13 + $0x500] sm:$0xff] }
 0x36b   :  { %2653 = vmatprep.mubr.bf16.mxu0 %v4271_v13  ;;  %2735 = vmatprep.mubr.bf16.mxu1 %v4271_v13  ;;  %v1208_v53 = vld [vmem:[#allocation13 + $0x520] sm:$0xff] }
 0x36c   :  { %2623 = vmatprep.subr.bf16.mxu0 %v3483_v8  ;;  %2705 = vmatprep.subr.bf16.mxu1 %v3485_v9  ;;  %v3507_v35 = vcombine.high %v1204_v52, %v1208_v53  ;;  %v3506_v45 = vcombine.low %v1204_v52, %v1208_v53  ;;  %v3539_v8 = vcombine.high %v1236_v32, %v1240_v33  ;;  %v1260_v53 = vld [vmem:[#allocation13 + $0x6c0] sm:$0xff] }
 0x36d   :  { %v3541_v9 = vcombine.high %v1237_v34, %v1241_v36  ;;  %v1280_v50 = vld [vmem:[#allocation13 + $0x760] sm:$0xff] }
 0x36e   :  { %2624 = vmatpush1.bf16.msra.mxu0 %v3482_v14  ;;  %2706 = vmatpush1.bf16.msra.mxu1 %v3484_v15  ;;  %v1249_v14 = vld [vmem:[#allocation13 + $0x668] sm:$0xff]  ;;  %v3538_v15 = vcombine.low %v1236_v32, %v1240_v33  ;;  %v1284_v0 = vld [vmem:[#allocation13 + $0x780] sm:$0xff] }
 0x36f   :  { %2625 = vmatprep.subr.bf16.mxu0 %v3491_v16  ;;  %2707 = vmatprep.subr.bf16.mxu1 %v3493_v17  ;;  %v3540_v16 = vcombine.low %v1237_v34, %v1241_v36  ;;  %v3547_v17 = vcombine.high %v1244_v10, %v1248_v11  ;;  %v3549_v20 = vcombine.high %v1245_v12, %v1249_v14  ;;  %v1288_v1 = vld [vmem:[#allocation13 + $0x7a0] sm:$0xff]  ;;  %v1293_v36 = vld [vmem:[#allocation13 + $0x7c8] sm:$0xff] }
 0x370   :  { %v1292_v33 = vld [vmem:[#allocation13 + $0x7c0] sm:$0xff] }
 0x371   :  { %v1296_v34 = vld [vmem:[#allocation13 + $0x7e0] sm:$0xff] }
 0x372   :  { %2626 = vmatpush1.bf16.msra.mxu0 %v3490_v42  ;;  %2708 = vmatpush1.bf16.msra.mxu1 %v3492_v48  ;;  %v1257_v42 = vld [vmem:[#allocation13 + $0x6a8] sm:$0xff]  ;;  %v3546_v48 = vcombine.low %v1244_v10, %v1248_v11  ;;  %v1046_v11 = vld [vmem:[#allocation13 + $0x10] sm:$0xff] }
 0x373   :  { %2627 = vmatprep.subr.bf16.mxu0 %v3499_v49  ;;  %2709 = vmatprep.subr.bf16.mxu1 %v3501_v51  ;;  %v3548_v49 = vcombine.low %v1245_v12, %v1249_v14  ;;  %v3555_v51 = vcombine.high %v1252_v23, %v1256_v25  ;;  %v3557_v52 = vcombine.high %v1253_v26, %v1257_v42  ;;  %v1034_v12 = vmul.f32 0.2, %v4261_v60  ;;  %v1050_v14 = vld [vmem:[#allocation13 + $0x30] sm:$0xff] }
 0x376   :  { %2628 = vmatpush1.bf16.msra.mxu0 %v3498_v29  ;;  %2710 = vmatpush1.bf16.msra.mxu1 %v3500_v30  ;;  %v1265_v29 = vld [vmem:[#allocation13 + $0x6e8] sm:$0xff]  ;;  %v3554_v30 = vcombine.low %v1252_v23, %v1256_v25  ;;  %v3351_v23 = vcombine.high %v1046_v11, %v1050_v14 }
 0x377   :  { %2629 = vmatprep.subr.bf16.mxu0 %v3507_v35  ;;  %2711 = vmatprep.subr.bf16.mxu1 %v3509_v38  ;;  %v3556_v35 = vcombine.low %v1253_v26, %v1257_v42  ;;  %v3563_v38 = vcombine.high %v1260_v53, %v1264_v27  ;;  %v3565_v40 = vcombine.high %v1261_v28, %v1265_v29  ;;  %v1054_v42 = vld [vmem:[#allocation13 + $0x50] sm:$0xff] }
 0x378   :  { %v1038_v26 = vsel %vm1030_vm8, %v4261_v60, %v1034_v12  ;;  %v1063_v60 = vld [vmem:[#allocation13 + $0x98] sm:$0xff] }
 0x37a   :  { %2630 = vmatpush1.bf16.msra.mxu0 %v3506_v45  ;;  %2712 = vmatpush1.bf16.msra.mxu1 %v3508_v55  ;;  %v1273_v45 = vld [vmem:[#allocation13 + $0x728] sm:$0xff]  ;;  %v3562_v55 = vcombine.low %v1260_v53, %v1264_v27  ;;  %v4284_v53 = vpack.c.bf16 %v1038_v26, %v1038_v26 }
 0x37b   :  { %2631 = vmatprep.subr.bf16.mxu0 %v3515_v39  ;;  %2713 = vmatprep.subr.bf16.mxu1 %v3517_v46  ;;  %v3564_v39 = vcombine.low %v1261_v28, %v1265_v29  ;;  %v3571_v46 = vcombine.high %v1268_v41, %v1272_v43  ;;  %v3573_v56 = vcombine.high %v1269_v44, %v1273_v45 }
 0x37e   :  { %2632 = vmatpush1.bf16.msra.mxu0 %v3514_v57  ;;  %2714 = vmatpush1.bf16.msra.mxu1 %v3516_v58  ;;  %v1281_v57 = vld [vmem:[#allocation13 + $0x768] sm:$0xff]  ;;  %v3570_v58 = vcombine.low %v1268_v41, %v1272_v43 }
 0x37f   :  { %2633 = vmatprep.subr.bf16.mxu0 %v3523_v61  ;;  %2715 = vmatprep.subr.bf16.mxu1 %v3525_v59  ;;  %v3572_v61 = vcombine.low %v1269_v44, %v1273_v45  ;;  %v3579_v59 = vcombine.high %v1276_v47, %v1280_v50  ;;  %v3581_v63 = vcombine.high %v1277_v54, %v1281_v57  ;;  %v1070_v45 = vld [vmem:[#allocation13 + $0xd0] sm:$0xff] }
 0x382   :  { %2634 = vmatpush1.bf16.msra.mxu0 %v3522_v2  ;;  %2716 = vmatpush1.bf16.msra.mxu1 %v3524_v3  ;;  %v1289_v2 = vld [vmem:[#allocation13 + $0x7a8] sm:$0xff]  ;;  %v3578_v3 = vcombine.low %v1276_v47, %v1280_v50 }
 0x383   :  { %2635 = vmatprep.subr.bf16.mxu0 %v3531_v4  ;;  %2717 = vmatprep.subr.bf16.mxu1 %v3533_v31  ;;  %v3580_v4 = vcombine.low %v1277_v54, %v1281_v57  ;;  %v3587_v31 = vcombine.high %v1284_v0, %v1288_v1  ;;  %v3589_v32 = vcombine.high %v1285_v62, %v1289_v2  ;;  %v1078_v57 = vld [vmem:[#allocation13 + $0x110] sm:$0xff] }
 0x386   :  { %2636 = vmatpush1.bf16.msra.mxu0 %v3530_v5  ;;  %2718 = vmatpush1.bf16.msra.mxu1 %v3532_v7  ;;  %v1297_v5 = vld [vmem:[#allocation13 + $0x7e8] sm:$0xff]  ;;  %v3586_v7 = vcombine.low %v1284_v0, %v1288_v1 }
 0x387   :  { %2637 = vmatprep.subr.bf16.mxu0 %v3539_v8  ;;  %2719 = vmatprep.subr.bf16.mxu1 %v3541_v9  ;;  %v3588_v8 = vcombine.low %v1285_v62, %v1289_v2  ;;  %v3595_v9 = vcombine.high %v1292_v33, %v1296_v34  ;;  %v3597_v10 = vcombine.high %v1293_v36, %v1297_v5  ;;  %v1086_v62 = vld [vmem:[#allocation13 + $0x150] sm:$0xff] }
 0x388   :  { %v1090_v2 = vld [vmem:[#allocation13 + $0x170] sm:$0xff] }
 0x38a   :  { %2638 = vmatpush1.bf16.msra.mxu0 %v3538_v15  ;;  %2720 = vmatpush1.bf16.msra.mxu1 %v3540_v16  ;;  %v1047_v15 = vld [vmem:[#allocation13 + $0x18] sm:$0xff] }
 0x38b   :  { %2639 = vmatprep.subr.bf16.mxu0 %v3547_v17  ;;  %2721 = vmatprep.subr.bf16.mxu1 %v3549_v20  ;;  %v1051_v16 = vld [vmem:[#allocation13 + $0x38] sm:$0xff]  ;;  %v3594_v17 = vcombine.low %v1292_v33, %v1296_v34  ;;  %v3596_v20 = vcombine.low %v1293_v36, %v1297_v5  ;;  %v3391_v33 = vcombine.high %v1086_v62, %v1090_v2  ;;  %v1094_v36 = vld [vmem:[#allocation13 + $0x190] sm:$0xff] }
 0x38c   :  { %v3353_v25 = vcombine.high %v1047_v15, %v1051_v16  ;;  %v3352_v27 = vcombine.low %v1047_v15, %v1051_v16  ;;  %v1098_v5 = vld [vmem:[#allocation13 + $0x1b0] sm:$0xff]  ;;  %v1103_v16 = vld [vmem:[#allocation13 + $0x1d8] sm:$0xff] }
 0x38d   :  { %v1106_v15 = vld [vmem:[#allocation13 + $0x1f0] sm:$0xff] }
 0x38e   :  { %2640 = vmatpush1.bf16.msra.mxu0 %v3546_v48  ;;  %2722 = vmatpush1.bf16.msra.mxu1 %v3548_v49  ;;  %v1058_v48 = vld [vmem:[#allocation13 + $0x70] sm:$0xff]  ;;  %v1055_v49 = vld [vmem:[#allocation13 + $0x58] sm:$0xff] }
 0x38f   :  { %2641 = vmatprep.subr.bf16.mxu0 %v3555_v51  ;;  %2723 = vmatprep.subr.bf16.mxu1 %v3557_v52  ;;  %v1059_v51 = vld [vmem:[#allocation13 + $0x78] sm:$0xff]  ;;  %v3350_v52 = vcombine.low %v1046_v11, %v1050_v14  ;;  %v3359_v28 = vcombine.high %v1054_v42, %v1058_v48  ;;  %v3399_v11 = vcombine.high %v1094_v36, %v1098_v5  ;;  %v1102_v14 = vld [vmem:[#allocation13 + $0x1d0] sm:$0xff] }
 0x390   :  { %v3361_v29 = vcombine.high %v1055_v49, %v1059_v51  ;;  %v3360_v41 = vcombine.low %v1055_v49, %v1059_v51  ;;  %v1111_v49 = vld [vmem:[#allocation13 + $0x218] sm:$0xff] }
 0x391   :  { %v1115_v51 = vld [vmem:[#allocation13 + $0x238] sm:$0xff] }
 0x392   :  { %2642 = vmatpush1.bf16.msra.mxu0 %v3554_v30  ;;  %2724 = vmatpush1.bf16.msra.mxu1 %v3556_v35  ;;  %v1062_v30 = vld [vmem:[#allocation13 + $0x90] sm:$0xff] }
 0x393   :  { %2643 = vmatprep.subr.bf16.mxu0 %v3563_v38  ;;  %2725 = vmatprep.subr.bf16.mxu1 %v3565_v40  ;;  %v1066_v35 = vld [vmem:[#allocation13 + $0xb0] sm:$0xff]  ;;  %v1067_v38 = vld [vmem:[#allocation13 + $0xb8] sm:$0xff]  ;;  %v3358_v40 = vcombine.low %v1054_v42, %v1058_v48 }
 0x394   :  { %v3367_v43 = vcombine.high %v1062_v30, %v1066_v35  ;;  %v3369_v44 = vcombine.high %v1063_v60, %v1067_v38  ;;  %v3368_v47 = vcombine.low %v1063_v60, %v1067_v38  ;;  %v1110_v42 = vld [vmem:[#allocation13 + $0x210] sm:$0xff]  ;;  %v1119_v60 = vld [vmem:[#allocation13 + $0x258] sm:$0xff] }
 0x395   :  { %v1114_v48 = vld [vmem:[#allocation13 + $0x230] sm:$0xff]  ;;  %v1123_v38 = vld [vmem:[#allocation13 + $0x278] sm:$0xff] }
 0x396   :  { %2644 = vmatpush1.bf16.msra.mxu0 %v3562_v55  ;;  %2726 = vmatpush1.bf16.msra.mxu1 %v3564_v39  ;;  %v1074_v55 = vld [vmem:[#allocation13 + $0xf0] sm:$0xff]  ;;  %v1071_v39 = vld [vmem:[#allocation13 + $0xd8] sm:$0xff] }
 0x397   :  { %2645 = vmatprep.subr.bf16.mxu0 %v3571_v46  ;;  %2727 = vmatprep.subr.bf16.mxu1 %v3573_v56  ;;  %v1075_v46 = vld [vmem:[#allocation13 + $0xf8] sm:$0xff]  ;;  %v3366_v56 = vcombine.low %v1062_v30, %v1066_v35  ;;  %v3375_v50 = vcombine.high %v1070_v45, %v1074_v55  ;;  %v1118_v30 = vld [vmem:[#allocation13 + $0x250] sm:$0xff] }
 0x398   :  { %v3377_v54 = vcombine.high %v1071_v39, %v1075_v46  ;;  %v1122_v35 = vld [vmem:[#allocation13 + $0x270] sm:$0xff] }
 0x39a   :  { %2646 = vmatpush1.bf16.msra.mxu0 %v3570_v58  ;;  %2728 = vmatpush1.bf16.msra.mxu1 %v3572_v61  ;;  %v1082_v58 = vld [vmem:[#allocation13 + $0x130] sm:$0xff]  ;;  %v1083_v61 = vld [vmem:[#allocation13 + $0x138] sm:$0xff] }
 0x39b   :  { %2647 = vmatprep.subr.bf16.mxu0 %v3579_v59  ;;  %2729 = vmatprep.subr.bf16.mxu1 %v3581_v63  ;;  %v3374_v59 = vcombine.low %v1070_v45, %v1074_v55  ;;  %v3376_v63 = vcombine.low %v1071_v39, %v1075_v46  ;;  %v3383_v0 = vcombine.high %v1078_v57, %v1082_v58  ;;  %v1126_v45 = vld [vmem:[#allocation13 + $0x290] sm:$0xff]  ;;  %v1127_v39 = vld [vmem:[#allocation13 + $0x298] sm:$0xff] }
 0x39c   :  { %v1130_v55 = vld [vmem:[#allocation13 + $0x2b0] sm:$0xff]  ;;  %v1131_v46 = vld [vmem:[#allocation13 + $0x2b8] sm:$0xff] }
 0x39e   :  { %2648 = vmatpush1.bf16.msra.mxu0 %v3578_v3  ;;  %2730 = vmatpush1.bf16.msra.mxu1 %v3580_v4  ;;  %v1087_v3 = vld [vmem:[#allocation13 + $0x158] sm:$0xff] }
 0x39f   :  { %2649 = vmatprep.subr.bf16.mxu0 %v3587_v31  ;;  %2731 = vmatprep.subr.bf16.mxu1 %v3589_v32  ;;  %v1091_v4 = vld [vmem:[#allocation13 + $0x178] sm:$0xff]  ;;  %v3382_v31 = vcombine.low %v1078_v57, %v1082_v58  ;;  %v1134_v57 = vld [vmem:[#allocation13 + $0x2d0] sm:$0xff] }
 0x3a0   :  { %v3393_v34 = vcombine.high %v1087_v3, %v1091_v4  ;;  %v1138_v58 = vld [vmem:[#allocation13 + $0x2f0] sm:$0xff] }
 0x3a2   :  { %2650 = vmatpush1.bf16.msra.mxu0 %v3586_v7  ;;  %2732 = vmatpush1.bf16.msra.mxu1 %v3588_v8  ;;  %v1095_v7 = vld [vmem:[#allocation13 + $0x198] sm:$0xff] }
 0x3a3   :  { %2651 = vmatprep.subr.bf16.mxu0 %v3595_v9  ;;  %2733 = vmatprep.subr.bf16.mxu1 %v3597_v10  ;;  %v1099_v8 = vld [vmem:[#allocation13 + $0x1b8] sm:$0xff]  ;;  %v3390_v9 = vcombine.low %v1086_v62, %v1090_v2  ;;  %v3392_v10 = vcombine.low %v1087_v3, %v1091_v4  ;;  %v1142_v62 = vld [vmem:[#allocation13 + $0x310] sm:$0xff] }
 0x3a4   :  { %v3401_v12 = vcombine.high %v1095_v7, %v1099_v8  ;;  %v1146_v2 = vld [vmem:[#allocation13 + $0x330] sm:$0xff]  ;;  %v1143_v3 = vld [vmem:[#allocation13 + $0x318] sm:$0xff] }
 0x3a5   :  { %v1147_v4 = vld [vmem:[#allocation13 + $0x338] sm:$0xff] }
 0x3a6   :  { %2652 = vmatpush1.bf16.msra.mxu0 %v3594_v17  ;;  %2734 = vmatpush1.bf16.msra.mxu1 %v3596_v20  ;;  %v1107_v17 = vld [vmem:[#allocation13 + $0x1f8] sm:$0xff]  ;;  %v3398_v20 = vcombine.low %v1094_v36, %v1098_v5  ;;  %v1150_v36 = vld [vmem:[#allocation13 + $0x350] sm:$0xff] }
 0x3a7   :  { %2744 = vmatprep.subr.bf16.mxu0 %v3351_v23  ;;  %2826 = vmatprep.subr.bf16.mxu1 %v3353_v25  ;;  %v3400_v23 = vcombine.low %v1095_v7, %v1099_v8  ;;  %v3407_v25 = vcombine.high %v1102_v14, %v1106_v15  ;;  %v3409_v26 = vcombine.high %v1103_v16, %v1107_v17  ;;  %v1154_v5 = vld [vmem:[#allocation13 + $0x370] sm:$0xff]  ;;  %v1151_v7 = vld [vmem:[#allocation13 + $0x358] sm:$0xff] }
 0x3a8   :  { %v1155_v8 = vld [vmem:[#allocation13 + $0x378] sm:$0xff] }
 0x3a9   :  { %2654 = vmatmul.mubr.bf16.vlgmr.msra.gmra.mrb[8].mxu0 %v4284_v53  ;;  %2736 = vmatmul.mubr.bf16.vlgmr.msra.gmra.mrb[8].mxu1 %v4284_v53 }
 0x3aa   :  { %2745 = vmatpush1.bf16.msra.mxu0 %v3350_v52  ;;  %2776 = vmatprep.mubr.bf16.mxu0 %v4263_v37  ;;  %v3406_v52 = vcombine.low %v1102_v14, %v1106_v15  ;;  %v1158_v14 = vld [vmem:[#allocation13 + $0x390] sm:$0xff] }
 0x3ab   :  { %2827 = vmatpush1.bf16.msra.mxu1 %v3352_v27  ;;  %2858 = vmatprep.mubr.bf16.mxu1 %v4263_v37  ;;  %v1079_v37 = vld [vmem:[#allocation13 + $0x118] sm:$0xff]  ;;  %v3408_v27 = vcombine.low %v1103_v16, %v1107_v17  ;;  %v1162_v15 = vld [vmem:[#allocation13 + $0x3b0] sm:$0xff] }
 0x3ac   :  { %2746 = vmatprep.subr.bf16.mxu0 %v3359_v28  ;;  %2828 = vmatprep.subr.bf16.mxu1 %v3361_v29  ;;  %v3385_v1 = vcombine.high %v1079_v37, %v1083_v61  ;;  %v3384_v32 = vcombine.low %v1079_v37, %v1083_v61  ;;  %v3415_v28 = vcombine.high %v1110_v42, %v1114_v48  ;;  %v1135_v37 = vld [vmem:[#allocation13 + $0x2d8] sm:$0xff] }
 0x3ad   :  { %v3417_v29 = vcombine.high %v1111_v49, %v1115_v51  ;;  %v1139_v61 = vld [vmem:[#allocation13 + $0x2f8] sm:$0xff] }
 0x3ae   :  { %2747 = vmatpush1.bf16.msra.mxu0 %v3358_v40  ;;  %v3414_v40 = vcombine.low %v1110_v42, %v1114_v48  ;;  %v1159_v16 = vld [vmem:[#allocation13 + $0x398] sm:$0xff]  ;;  %v1166_v42 = vld [vmem:[#allocation13 + $0x3d0] sm:$0xff] }
 0x3af   :  { %2829 = vmatpush1.bf16.msra.mxu1 %v3360_v41  ;;  %2748 = vmatprep.subr.bf16.mxu0 %v3367_v43  ;;  %v3416_v41 = vcombine.low %v1111_v49, %v1115_v51  ;;  %v3423_v43 = vcombine.high %v1118_v30, %v1122_v35  ;;  %v1163_v17 = vld [vmem:[#allocation13 + $0x3b8] sm:$0xff]  ;;  %v1170_v48 = vld [vmem:[#allocation13 + $0x3f0] sm:$0xff] }
 0x3b0   :  { %2830 = vmatprep.subr.bf16.mxu1 %v3369_v44  ;;  %v3425_v44 = vcombine.high %v1119_v60, %v1123_v38  ;;  %v1167_v49 = vld [vmem:[#allocation13 + $0x3d8] sm:$0xff] }
 0x3b1   :  { %v1171_v51 = vld [vmem:[#allocation13 + $0x3f8] sm:$0xff] }
 0x3b2   :  { %2749 = vmatpush1.bf16.msra.mxu0 %v3366_v56  ;;  %v3422_v56 = vcombine.low %v1118_v30, %v1122_v35  ;;  %v1174_v30 = vld [vmem:[#allocation13 + $0x410] sm:$0xff] }
 0x3b3   :  { %2831 = vmatpush1.bf16.msra.mxu1 %v3368_v47  ;;  %2750 = vmatprep.subr.bf16.mxu0 %v3375_v50  ;;  %v3424_v47 = vcombine.low %v1119_v60, %v1123_v38  ;;  %v3431_v50 = vcombine.high %v1126_v45, %v1130_v55  ;;  %v1178_v35 = vld [vmem:[#allocation13 + $0x430] sm:$0xff]  ;;  %v1175_v60 = vld [vmem:[#allocation13 + $0x418] sm:$0xff] }
 0x3b4   :  { %2832 = vmatprep.subr.bf16.mxu1 %v3377_v54  ;;  %v3433_v54 = vcombine.high %v1127_v39, %v1131_v46  ;;  %v1179_v38 = vld [vmem:[#allocation13 + $0x438] sm:$0xff] }
 0x3b6   :  { %2751 = vmatpush1.bf16.msra.mxu0 %v3374_v59  ;;  %v3430_v59 = vcombine.low %v1126_v45, %v1130_v55  ;;  %v1182_v45 = vld [vmem:[#allocation13 + $0x450] sm:$0xff] }
 0x3b7   :  { %2833 = vmatpush1.bf16.msra.mxu1 %v3376_v63  ;;  %2752 = vmatprep.subr.bf16.mxu0 %v3383_v0  ;;  %v3432_v63 = vcombine.low %v1127_v39, %v1131_v46  ;;  %v3439_v0 = vcombine.high %v1134_v57, %v1138_v58  ;;  %v1186_v55 = vld [vmem:[#allocation13 + $0x470] sm:$0xff]  ;;  %v3478_v39 = vcombine.low %v1174_v30, %v1178_v35  ;;  %v1183_v46 = vld [vmem:[#allocation13 + $0x458] sm:$0xff] }
 0x3b8   :  { %2834 = vmatprep.subr.bf16.mxu1 %v3385_v1  ;;  %v3441_v1 = vcombine.high %v1135_v37, %v1139_v61 }
 0x3ba   :  { %2753 = vmatpush1.bf16.msra.mxu0 %v3382_v31  ;;  %v3438_v31 = vcombine.low %v1134_v57, %v1138_v58  ;;  %v1194_v57 = vld [vmem:[#allocation13 + $0x4b0] sm:$0xff] }
 0x3bb   :  { %2835 = vmatpush1.bf16.msra.mxu1 %v3384_v32  ;;  %2754 = vmatprep.subr.bf16.mxu0 %v3391_v33  ;;  %v3440_v32 = vcombine.low %v1135_v37, %v1139_v61  ;;  %v3447_v33 = vcombine.high %v1142_v62, %v1146_v2  ;;  %v1191_v37 = vld [vmem:[#allocation13 + $0x498] sm:$0xff] }
 0x3bc   :  { %2836 = vmatprep.subr.bf16.mxu1 %v3393_v34  ;;  %v3449_v34 = vcombine.high %v1143_v3, %v1147_v4  ;;  %v1195_v61 = vld [vmem:[#allocation13 + $0x4b8] sm:$0xff] }
 0x3be   :  { %2755 = vmatpush1.bf16.msra.mxu0 %v3390_v9  ;;  %v3446_v9 = vcombine.low %v1142_v62, %v1146_v2  ;;  %v1198_v62 = vld [vmem:[#allocation13 + $0x4d0] sm:$0xff] }
 0x3bf   :  { %2837 = vmatpush1.bf16.msra.mxu1 %v3392_v10  ;;  %2756 = vmatprep.subr.bf16.mxu0 %v3399_v11  ;;  %v3448_v10 = vcombine.low %v1143_v3, %v1147_v4  ;;  %v3455_v11 = vcombine.high %v1150_v36, %v1154_v5  ;;  %v1202_v2 = vld [vmem:[#allocation13 + $0x4f0] sm:$0xff]  ;;  %v1199_v3 = vld [vmem:[#allocation13 + $0x4d8] sm:$0xff] }
 0x3c0   :  { %2838 = vmatprep.subr.bf16.mxu1 %v3401_v12  ;;  %v3457_v12 = vcombine.high %v1151_v7, %v1155_v8  ;;  %v1203_v4 = vld [vmem:[#allocation13 + $0x4f8] sm:$0xff] }
 0x3c2   :  { %2757 = vmatpush1.bf16.msra.mxu0 %v3398_v20  ;;  %v3454_v20 = vcombine.low %v1150_v36, %v1154_v5  ;;  %v1210_v36 = vld [vmem:[#allocation13 + $0x530] sm:$0xff]  ;;  %v1207_v5 = vld [vmem:[#allocation13 + $0x518] sm:$0xff] }
 0x3c3   :  { %2839 = vmatpush1.bf16.msra.mxu1 %v3400_v23  ;;  %2758 = vmatprep.subr.bf16.mxu0 %v3407_v25  ;;  %v3456_v23 = vcombine.low %v1151_v7, %v1155_v8  ;;  %v3463_v25 = vcombine.high %v1158_v14, %v1162_v15  ;;  %v1211_v7 = vld [vmem:[#allocation13 + $0x538] sm:$0xff]  ;;  %v3504_v8 = vcombine.low %v1199_v3, %v1203_v4 }
 0x3c4   :  { %2840 = vmatprep.subr.bf16.mxu1 %v3409_v26  ;;  %v3465_v26 = vcombine.high %v1159_v16, %v1163_v17 }
 0x3c6   :  { %2759 = vmatpush1.bf16.msra.mxu0 %v3406_v52  ;;  %v3462_v52 = vcombine.low %v1158_v14, %v1162_v15  ;;  %v1215_v14 = vld [vmem:[#allocation13 + $0x558] sm:$0xff] }
 0x3c7   :  { %2841 = vmatpush1.bf16.msra.mxu1 %v3408_v27  ;;  %2760 = vmatprep.subr.bf16.mxu0 %v3415_v28  ;;  %v3464_v27 = vcombine.low %v1159_v16, %v1163_v17  ;;  %v3471_v28 = vcombine.high %v1166_v42, %v1170_v48  ;;  %v1219_v15 = vld [vmem:[#allocation13 + $0x578] sm:$0xff]  ;;  %v3512_v17 = vcombine.low %v1207_v5, %v1211_v7 }
 0x3c8   :  { %2842 = vmatprep.subr.bf16.mxu1 %v3417_v29  ;;  %v3473_v29 = vcombine.high %v1167_v49, %v1171_v51 }
 0x3ca   :  { %2761 = vmatpush1.bf16.msra.mxu0 %v3414_v40  ;;  %v3470_v40 = vcombine.low %v1166_v42, %v1170_v48  ;;  %v1223_v42 = vld [vmem:[#allocation13 + $0x598] sm:$0xff] }
 0x3cb   :  { %2843 = vmatpush1.bf16.msra.mxu1 %v3416_v41  ;;  %2762 = vmatprep.subr.bf16.mxu0 %v3423_v43  ;;  %v3472_v41 = vcombine.low %v1167_v49, %v1171_v51  ;;  %v3479_v43 = vcombine.high %v1174_v30, %v1178_v35  ;;  %v1227_v48 = vld [vmem:[#allocation13 + $0x5b8] sm:$0xff]  ;;  %v3520_v51 = vcombine.low %v1215_v14, %v1219_v15 }
 0x3cc   :  { %2844 = vmatprep.subr.bf16.mxu1 %v3425_v44  ;;  %v3481_v44 = vcombine.high %v1175_v60, %v1179_v38  ;;  %v1231_v30 = vld [vmem:[#allocation13 + $0x5d8] sm:$0xff] }
 0x3cd   :  { %v1235_v35 = vld [vmem:[#allocation13 + $0x5f8] sm:$0xff] }
 0x3ce   :  { %2763 = vmatpush1.bf16.msra.mxu0 %v3422_v56  ;;  %v1187_v56 = vld [vmem:[#allocation13 + $0x478] sm:$0xff] }
 0x3cf   :  { %2845 = vmatpush1.bf16.msra.mxu1 %v3424_v47  ;;  %2764 = vmatprep.subr.bf16.mxu0 %v3431_v50  ;;  %v3480_v47 = vcombine.low %v1175_v60, %v1179_v38  ;;  %v3487_v50 = vcombine.high %v1182_v45, %v1186_v55  ;;  %v3489_v58 = vcombine.high %v1183_v46, %v1187_v56 }
 0x3d0   :  { %2846 = vmatprep.subr.bf16.mxu1 %v3433_v54  ;;  %v1190_v54 = vld [vmem:[#allocation13 + $0x490] sm:$0xff]  ;;  %v3528_v38 = vcombine.low %v1223_v42, %v1227_v48 }
 0x3d2   :  { %2765 = vmatpush1.bf16.msra.mxu0 %v3430_v59  ;;  %v3486_v59 = vcombine.low %v1182_v45, %v1186_v55  ;;  %v1239_v45 = vld [vmem:[#allocation13 + $0x618] sm:$0xff] }
 0x3d3   :  { %2847 = vmatpush1.bf16.msra.mxu1 %v3432_v63  ;;  %2766 = vmatprep.subr.bf16.mxu0 %v3439_v0  ;;  %v3488_v63 = vcombine.low %v1183_v46, %v1187_v56  ;;  %v3495_v0 = vcombine.high %v1190_v54, %v1194_v57  ;;  %v1243_v55 = vld [vmem:[#allocation13 + $0x638] sm:$0xff]  ;;  %v3536_v46 = vcombine.low %v1231_v30, %v1235_v35 }
 0x3d4   :  { %2848 = vmatprep.subr.bf16.mxu1 %v3441_v1  ;;  %v3497_v1 = vcombine.high %v1191_v37, %v1195_v61 }
 0x3d6   :  { %2767 = vmatpush1.bf16.msra.mxu0 %v3438_v31  ;;  %v3494_v31 = vcombine.low %v1190_v54, %v1194_v57  ;;  %v1250_v54 = vld [vmem:[#allocation13 + $0x670] sm:$0xff]  ;;  %v1247_v57 = vld [vmem:[#allocation13 + $0x658] sm:$0xff] }
 0x3d7   :  { %2849 = vmatpush1.bf16.msra.mxu1 %v3440_v32  ;;  %2768 = vmatprep.subr.bf16.mxu0 %v3447_v33  ;;  %v3503_v32 = vcombine.high %v1198_v62, %v1202_v2  ;;  %v3505_v33 = vcombine.high %v1199_v3, %v1203_v4 }
 0x3d8   :  { %2850 = vmatprep.subr.bf16.mxu1 %v3449_v34  ;;  %v1206_v34 = vld [vmem:[#allocation13 + $0x510] sm:$0xff] }
 0x3d9   :  { %v3510_v16 = vcombine.low %v1206_v34, %v1210_v36 }
 0x3da   :  { %2769 = vmatpush1.bf16.msra.mxu0 %v3446_v9  ;;  %v3511_v9 = vcombine.high %v1206_v34, %v1210_v36  ;;  %v1263_v34 = vld [vmem:[#allocation13 + $0x6d8] sm:$0xff] }
 0x3db   :  { %2851 = vmatpush1.bf16.msra.mxu1 %v3448_v10  ;;  %2770 = vmatprep.subr.bf16.mxu0 %v3455_v11  ;;  %v3513_v10 = vcombine.high %v1207_v5, %v1211_v7  ;;  %v1214_v11 = vld [vmem:[#allocation13 + $0x550] sm:$0xff]  ;;  %v1267_v36 = vld [vmem:[#allocation13 + $0x6f8] sm:$0xff] }
 0x3dc   :  { %2852 = vmatprep.subr.bf16.mxu1 %v3457_v12  ;;  %v1218_v12 = vld [vmem:[#allocation13 + $0x570] sm:$0xff] }
 0x3dd   :  { %v3518_v49 = vcombine.low %v1214_v11, %v1218_v12 }
 0x3de   :  { %2771 = vmatpush1.bf16.msra.mxu0 %v3454_v20  ;;  %v3519_v20 = vcombine.high %v1214_v11, %v1218_v12  ;;  %v1271_v11 = vld [vmem:[#allocation13 + $0x718] sm:$0xff] }
 0x3df   :  { %2853 = vmatpush1.bf16.msra.mxu1 %v3456_v23  ;;  %2772 = vmatprep.subr.bf16.mxu0 %v3463_v25  ;;  %v3521_v23 = vcombine.high %v1215_v14, %v1219_v15  ;;  %v1222_v25 = vld [vmem:[#allocation13 + $0x590] sm:$0xff]  ;;  %v1275_v12 = vld [vmem:[#allocation13 + $0x738] sm:$0xff]  ;;  %v3568_v15 = vcombine.low %v1263_v34, %v1267_v36 }
 0x3e0   :  { %2854 = vmatprep.subr.bf16.mxu1 %v3465_v26  ;;  %v1226_v26 = vld [vmem:[#allocation13 + $0x5b0] sm:$0xff] }
 0x3e1   :  { %v3526_v60 = vcombine.low %v1222_v25, %v1226_v26 }
 0x3e2   :  { %2773 = vmatpush1.bf16.msra.mxu0 %v3462_v52  ;;  %v3527_v52 = vcombine.high %v1222_v25, %v1226_v26  ;;  %v1279_v25 = vld [vmem:[#allocation13 + $0x758] sm:$0xff] }
 0x3e3   :  { %2855 = vmatpush1.bf16.msra.mxu1 %v3464_v27  ;;  %2774 = vmatprep.subr.bf16.mxu0 %v3471_v28  ;;  %v3529_v27 = vcombine.high %v1223_v42, %v1227_v48  ;;  %v1230_v28 = vld [vmem:[#allocation13 + $0x5d0] sm:$0xff]  ;;  %v1283_v26 = vld [vmem:[#allocation13 + $0x778] sm:$0xff]  ;;  %v3576_v48 = vcombine.low %v1271_v11, %v1275_v12 }
 0x3e4   :  { %2856 = vmatprep.subr.bf16.mxu1 %v3473_v29  ;;  %v1234_v29 = vld [vmem:[#allocation13 + $0x5f0] sm:$0xff] }
 0x3e6   :  { %2775 = vmatpush1.bf16.msra.mxu0 %v3470_v40  ;;  %v3535_v40 = vcombine.high %v1230_v28, %v1234_v29 }
 0x3e7   :  { %2857 = vmatpush1.bf16.msra.mxu1 %v3472_v41  ;;  %2785 = vmatprep.subr.bf16.mxu0 %v3479_v43  ;;  %v3537_v41 = vcombine.high %v1231_v30, %v1235_v35  ;;  %v1238_v43 = vld [vmem:[#allocation13 + $0x610] sm:$0xff]  ;;  %v3584_v35 = vcombine.low %v1279_v25, %v1283_v26 }
 0x3e8   :  { %2867 = vmatprep.subr.bf16.mxu1 %v3481_v44  ;;  %v1242_v44 = vld [vmem:[#allocation13 + $0x630] sm:$0xff] }
 0x3e9   :  { %2777 = vmatmul.mubr.bf16.vlgmr.msra.gmra.mrb[12].mxu0 %v4265_v6  ;;  %v3543_v56 = vcombine.high %v1238_v43, %v1242_v44 }
 0x3ea   :  { %2859 = vmatmul.mubr.bf16.vlgmr.msra.gmra.mrb[12].mxu1 %v4265_v6  ;;  %2786 = vmatpush1.bf16.msra.mxu0 %v3478_v39  ;;  %v3496_v6 = vcombine.low %v1191_v37, %v1195_v61  ;;  %v3534_v39 = vcombine.low %v1230_v28, %v1234_v29  ;;  %v3542_v37 = vcombine.low %v1238_v43, %v1242_v44  ;;  %v1287_v28 = vld [vmem:[#allocation13 + $0x798] sm:$0xff] }
 0x3eb   :  { %2817 = vmatprep.mubr.bf16.mxu0 %v4271_v13  ;;  %2868 = vmatpush1.bf16.msra.mxu1 %v3480_v47  ;;  %v3545_v47 = vcombine.high %v1239_v45, %v1243_v55  ;;  %v3544_v61 = vcombine.low %v1239_v45, %v1243_v55  ;;  %v1291_v29 = vld [vmem:[#allocation13 + $0x7b8] sm:$0xff] }
 0x3ec   :  { %2899 = vmatprep.mubr.bf16.mxu1 %v4271_v13  ;;  %2787 = vmatprep.subr.bf16.mxu0 %v3487_v50  ;;  %v3502_v13 = vcombine.low %v1198_v62, %v1202_v2  ;;  %v1246_v50 = vld [vmem:[#allocation13 + $0x650] sm:$0xff]  ;;  %v1255_v62 = vld [vmem:[#allocation13 + $0x698] sm:$0xff]  ;;  %v3592_v55 = vcombine.low %v1287_v28, %v1291_v29 }
 0x3ed   :  { %2869 = vmatprep.subr.bf16.mxu1 %v3489_v58  ;;  %v1251_v58 = vld [vmem:[#allocation13 + $0x678] sm:$0xff]  ;;  %v3550_v3 = vcombine.low %v1246_v50, %v1250_v54 }
 0x3ee   :  { %2788 = vmatpush1.bf16.msra.mxu0 %v3486_v59  ;;  %v3551_v59 = vcombine.high %v1246_v50, %v1250_v54  ;;  %v1259_v2 = vld [vmem:[#allocation13 + $0x6b8] sm:$0xff]  ;;  %v3552_v4 = vcombine.low %v1247_v57, %v1251_v58 }
 0x3ef   :  { %2870 = vmatpush1.bf16.msra.mxu1 %v3488_v63  ;;  %2789 = vmatprep.subr.bf16.mxu0 %v3495_v0  ;;  %v3553_v63 = vcombine.high %v1247_v57, %v1251_v58  ;;  %v1254_v0 = vld [vmem:[#allocation13 + $0x690] sm:$0xff]  ;;  %v3560_v7 = vcombine.low %v1255_v62, %v1259_v2  ;;  %v1295_v43 = vld [vmem:[#allocation13 + $0x7d8] sm:$0xff] }
 0x3f0   :  { %2871 = vmatprep.subr.bf16.mxu1 %v3497_v1  ;;  %v1258_v1 = vld [vmem:[#allocation13 + $0x6b0] sm:$0xff]  ;;  %v1299_v44 = vld [vmem:[#allocation13 + $0x7f8] sm:$0xff] }
 0x3f1   :  { %v3558_v5 = vcombine.low %v1254_v0, %v1258_v1 }
 0x3f2   :  { %2790 = vmatpush1.bf16.msra.mxu0 %v3494_v31  ;;  %v3559_v31 = vcombine.high %v1254_v0, %v1258_v1 }
 0x3f3   :  { %2872 = vmatpush1.bf16.msra.mxu1 %v3496_v6  ;;  %2791 = vmatprep.subr.bf16.mxu0 %v3503_v32  ;;  %v3561_v6 = vcombine.high %v1255_v62, %v1259_v2  ;;  %v1262_v32 = vld [vmem:[#allocation13 + $0x6d0] sm:$0xff] }
 0x3f4   :  { %2873 = vmatprep.subr.bf16.mxu1 %v3505_v33  ;;  %v1266_v33 = vld [vmem:[#allocation13 + $0x6f0] sm:$0xff] }
 0x3f5   :  { %v3566_v14 = vcombine.low %v1262_v32, %v1266_v33 }
 0x3f6   :  { %2792 = vmatpush1.bf16.msra.mxu0 %v3502_v13  ;;  %v3567_v13 = vcombine.high %v1262_v32, %v1266_v33 }
 0x3f7   :  { %2874 = vmatpush1.bf16.msra.mxu1 %v3504_v8  ;;  %2793 = vmatprep.subr.bf16.mxu0 %v3511_v9  ;;  %v3569_v8 = vcombine.high %v1263_v34, %v1267_v36  ;;  %v1270_v9 = vld [vmem:[#allocation13 + $0x710] sm:$0xff] }
 0x3f8   :  { %2875 = vmatprep.subr.bf16.mxu1 %v3513_v10  ;;  %v1274_v10 = vld [vmem:[#allocation13 + $0x730] sm:$0xff] }
 0x3f9   :  { %v3574_v42 = vcombine.low %v1270_v9, %v1274_v10 }
 0x3fa   :  { %2794 = vmatpush1.bf16.msra.mxu0 %v3510_v16  ;;  %v3575_v16 = vcombine.high %v1270_v9, %v1274_v10 }
 0x3fb   :  { %2876 = vmatpush1.bf16.msra.mxu1 %v3512_v17  ;;  %2795 = vmatprep.subr.bf16.mxu0 %v3519_v20  ;;  %v3577_v17 = vcombine.high %v1271_v11, %v1275_v12  ;;  %v1278_v20 = vld [vmem:[#allocation13 + $0x750] sm:$0xff] }
 0x3fc   :  { %2877 = vmatprep.subr.bf16.mxu1 %v3521_v23  ;;  %v1282_v23 = vld [vmem:[#allocation13 + $0x770] sm:$0xff] }
 0x3fd   :  { %v3582_v30 = vcombine.low %v1278_v20, %v1282_v23 }
 0x3fe   :  { %2796 = vmatpush1.bf16.msra.mxu0 %v3518_v49  ;;  %v3583_v49 = vcombine.high %v1278_v20, %v1282_v23 }
 0x3ff   :  { %2878 = vmatpush1.bf16.msra.mxu1 %v3520_v51  ;;  %2797 = vmatprep.subr.bf16.mxu0 %v3527_v52  ;;  %v3585_v51 = vcombine.high %v1279_v25, %v1283_v26  ;;  %v1286_v52 = vld [vmem:[#allocation13 + $0x790] sm:$0xff] }
 0x400   :  { %2879 = vmatprep.subr.bf16.mxu1 %v3529_v27  ;;  %v1290_v27 = vld [vmem:[#allocation13 + $0x7b0] sm:$0xff] }
 0x401   :  { %v3590_v45 = vcombine.low %v1286_v52, %v1290_v27 }
 0x402   :  { %2798 = vmatpush1.bf16.msra.mxu0 %v3526_v60  ;;  %v3591_v60 = vcombine.high %v1286_v52, %v1290_v27 }
 0x403   :  { %2880 = vmatpush1.bf16.msra.mxu1 %v3528_v38  ;;  %2799 = vmatprep.subr.bf16.mxu0 %v3535_v40  ;;  %v3593_v38 = vcombine.high %v1287_v28, %v1291_v29  ;;  %v1294_v40 = vld [vmem:[#allocation13 + $0x7d0] sm:$0xff] }
 0x404   :  { %2881 = vmatprep.subr.bf16.mxu1 %v3537_v41  ;;  %v1298_v41 = vld [vmem:[#allocation13 + $0x7f0] sm:$0xff] }
 0x406   :  { %2800 = vmatpush1.bf16.msra.mxu0 %v3534_v39  ;;  %v3599_v39 = vcombine.high %v1294_v40, %v1298_v41 }
 0x407   :  { %2882 = vmatpush1.bf16.msra.mxu1 %v3536_v46  ;;  %2801 = vmatprep.subr.bf16.mxu0 %v3543_v56  ;;  %v3601_v46 = vcombine.high %v1295_v43, %v1299_v44  ;;  %v3598_v56 = vcombine.low %v1294_v40, %v1298_v41 }
 0x408   :  { %2883 = vmatprep.subr.bf16.mxu1 %v3545_v47  ;;  %v3600_v47 = vcombine.low %v1295_v43, %v1299_v44 }
 0x40a   :  { %2802 = vmatpush1.bf16.msra.mxu0 %v3542_v37 }
 0x40b   :  { %2884 = vmatpush1.bf16.msra.mxu1 %v3544_v61  ;;  %2803 = vmatprep.subr.bf16.mxu0 %v3551_v59 }
 0x40c   :  { %2885 = vmatprep.subr.bf16.mxu1 %v3553_v63 }
 0x40e   :  { %2804 = vmatpush1.bf16.msra.mxu0 %v3550_v3 }
 0x40f   :  { %2886 = vmatpush1.bf16.msra.mxu1 %v3552_v4  ;;  %2805 = vmatprep.subr.bf16.mxu0 %v3559_v31 }
 0x410   :  { %2887 = vmatprep.subr.bf16.mxu1 %v3561_v6 }
 0x412   :  { %2806 = vmatpush1.bf16.msra.mxu0 %v3558_v5 }
 0x413   :  { %2888 = vmatpush1.bf16.msra.mxu1 %v3560_v7  ;;  %2807 = vmatprep.subr.bf16.mxu0 %v3567_v13 }
 0x414   :  { %2889 = vmatprep.subr.bf16.mxu1 %v3569_v8 }
 0x416   :  { %2808 = vmatpush1.bf16.msra.mxu0 %v3566_v14 }
 0x417   :  { %2890 = vmatpush1.bf16.msra.mxu1 %v3568_v15  ;;  %2809 = vmatprep.subr.bf16.mxu0 %v3575_v16 }
 0x418   :  { %2891 = vmatprep.subr.bf16.mxu1 %v3577_v17 }
 0x41a   :  { %2810 = vmatpush1.bf16.msra.mxu0 %v3574_v42 }
 0x41b   :  { %2892 = vmatpush1.bf16.msra.mxu1 %v3576_v48  ;;  %2811 = vmatprep.subr.bf16.mxu0 %v3583_v49 }
 0x41c   :  { %2893 = vmatprep.subr.bf16.mxu1 %v3585_v51 }
 0x41e   :  { %2812 = vmatpush1.bf16.msra.mxu0 %v3582_v30 }
 0x41f   :  { %2894 = vmatpush1.bf16.msra.mxu1 %v3584_v35  ;;  %2813 = vmatprep.subr.bf16.mxu0 %v3591_v60 }
 0x420   :  { %2895 = vmatprep.subr.bf16.mxu1 %v3593_v38 }
 0x422   :  { %2814 = vmatpush1.bf16.msra.mxu0 %v3590_v45 }
 0x423   :  { %2896 = vmatpush1.bf16.msra.mxu1 %v3592_v55  ;;  %2815 = vmatprep.subr.bf16.mxu0 %v3599_v39 }
 0x424   :  { %2897 = vmatprep.subr.bf16.mxu1 %v3601_v46 }
 0x426   :  { %2816 = vmatpush1.bf16.msra.mxu0 %v3598_v56 }
 0x427   :  { %2898 = vmatpush1.bf16.msra.mxu1 %v3600_v47 }
 0x429   :  { %2818 = vmatmul.mubr.bf16.vlgmr.msra.gmra.mrb[12].mxu0 %v4284_v53 }
 0x42a   :  { %2900 = vmatmul.mubr.bf16.vlgmr.msra.gmra.mrb[12].mxu1 %v4284_v53 }
 0x47c   :  { %v4296_v50 = vpop.f32.mrb[8].mxu0  ;;  %v4298_v54 = vpop.f32.mrb[8].mxu1 }
 0x47d   :  { %v2910_v57 = vrot.slane %v4296_v50, 4  ;;  %v2958_v58 = vmul.f32 %v4296_v50, %v4296_v50  ;;  %v2922_v37 = vrot.slane %v4298_v54, 4  ;;  %v2960_v61 = vmul.f32 %v4298_v54, %v4298_v54  ;;  %v4306_v59 = vpop.f32.mrb[9].mxu0  ;;  %v4308_v63 = vpop.f32.mrb[9].mxu1 }
 0x47e   :  { %v2916_v53 = vrot.slane %v4306_v59, 4  ;;  %v2959_v0 = vmul.f32 %v4306_v59, %v4306_v59  ;;  %v2928_v1 = vrot.slane %v4308_v63, 4  ;;  %v2961_v62 = vmul.f32 %v4308_v63, %v4308_v63  ;;  %v2659_v2 = vpop.f32.mrb[10].mxu0  ;;  %v2741_v3 = vpop.f32.mrb[10].mxu1 }
 0x47f   :  { %v2911_v4 = vadd.f32 %v2910_v57, %v4296_v50  ;;  %v2966_v31 = vrot.slane %v2958_v58, 4  ;;  %v2923_v6 = vadd.f32 %v2922_v37, %v4298_v54  ;;  %v2978_v32 = vrot.slane %v2960_v61, 4  ;;  %v2660_v33 = vpop.f32.mrb[11].mxu0  ;;  %v2742_v34 = vpop.f32.mrb[11].mxu1 }
 0x480   :  { %v2917_v36 = vadd.f32 %v2916_v53, %v4306_v59  ;;  %v2972_v5 = vrot.slane %v2959_v0, 4  ;;  %v2929_v7 = vadd.f32 %v2928_v1, %v4308_v63  ;;  %v2984_v13 = vrot.slane %v2961_v62, 4 }
 0x481   :  { %v2912_v8 = vrot.slane %v2911_v4, 2  ;;  %v2967_v9 = vadd.f32 %v2966_v31, %v2958_v58  ;;  %v2924_v10 = vrot.slane %v2923_v6, 2  ;;  %v2979_v11 = vadd.f32 %v2978_v32, %v2960_v61 }
 0x482   :  { %v2918_v12 = vrot.slane %v2917_v36, 2  ;;  %v2973_v14 = vadd.f32 %v2972_v5, %v2959_v0  ;;  %v2930_v15 = vrot.slane %v2929_v7, 2  ;;  %v2985_v16 = vadd.f32 %v2984_v13, %v2961_v62 }
 0x483   :  { %v2913_v17 = vadd.f32 %v2912_v8, %v2911_v4  ;;  %v2968_v20 = vrot.slane %v2967_v9, 2  ;;  %v2925_v23 = vadd.f32 %v2924_v10, %v2923_v6  ;;  %v2980_v25 = vrot.slane %v2979_v11, 2 }
 0x484   :  { %v2919_v26 = vadd.f32 %v2918_v12, %v2917_v36  ;;  %v2974_v42 = vrot.slane %v2973_v14, 2  ;;  %v2931_v48 = vadd.f32 %v2930_v15, %v2929_v7  ;;  %v2986_v49 = vrot.slane %v2985_v16, 2  ;;  %v4328_v15 = vld [vmem:[%s4413_s11] sm:$0xff] }
 0x485   :  { %v2914_v51 = vrot.slane %v2913_v17, 1  ;;  %v2969_v52 = vadd.f32 %v2968_v20, %v2967_v9  ;;  %v2926_v27 = vrot.slane %v2925_v23, 1  ;;  %v2981_v28 = vadd.f32 %v2980_v25, %v2979_v11 }
 0x486   :  { %v2920_v29 = vrot.slane %v2919_v26, 1  ;;  %v2975_v30 = vadd.f32 %v2974_v42, %v2973_v14  ;;  %v2932_v35 = vrot.slane %v2931_v48, 1  ;;  %v2987_v60 = vadd.f32 %v2986_v49, %v2985_v16  ;;  %v4323_v14 = vld [vmem:[%s4412_s10] sm:$0xff]  ;;  %s4010_s10 = smov [#allocation14]  }
 0x487   :  { %v2915_v38 = vadd.f32 %v2914_v51, %v2913_v17  ;;  %v2970_v40 = vrot.slane %v2969_v52, 1  ;;  %v2927_v41 = vadd.f32 %v2926_v27, %v2925_v23  ;;  %v2982_v43 = vrot.slane %v2981_v28, 1  ;;  %s3250_s11 = sshll.u32 %s4010_s10, 4  ;;  %s3251_s11 = int_to_ptr.vmem [resolvable:$true] %s3250_s11 }
 0x488   :  { %v2921_v44 = vadd.f32 %v2920_v29, %v2919_v26  ;;  %v2976_v45 = vrot.slane %v2975_v30, 1  ;;  %v2933_v55 = vadd.f32 %v2932_v35, %v2931_v48  ;;  %v2988_v39 = vrot.slane %v2987_v60, 1  ;;  %s3960_s13 = scalar_lea.vmem %s3251_s11, 512  ;;  %p3965_p1 = scmp.lt.s32.totalorder %s3251_s11, %s3251_s11 }
 0x489   :  { %v2971_v46 = vadd.f32 %v2970_v40, %v2969_v52  ;;  %v3014_v56 = vmul.f32 0.125, %v2915_v38  ;;  %v2983_v47 = vadd.f32 %v2982_v43, %v2981_v28  ;;  %v3016_v57 = vmul.f32 0.125, %v2927_v41  ;;  %p3961_p0 = scmp.ne.s32.totalorder %s3251_s11, %s3960_s13  ;;  %p3966_p2 = scmp.lt.s32.totalorder %s3960_s13, %s3960_s13 }
 0x48a   :  { %v2977_v58 = vadd.f32 %v2976_v45, %v2975_v30  ;;  %v3015_v37 = vmul.f32 0.125, %v2921_v44  ;;  %v2989_v61 = vadd.f32 %v2988_v39, %v2987_v60  ;;  %v3017_v53 = vmul.f32 0.125, %v2933_v55 }
 0x48b   :  { %v3022_v0 = vmul.f32 0.125, %v2971_v46  ;;  %v3030_v1 = vmul.f32 %v3014_v56, %v3014_v56  ;;  %v3024_v62 = vmul.f32 0.125, %v2983_v47  ;;  %v3032_v2 = vmul.f32 %v3016_v57, %v3016_v57  ;;  %p3967_p3 = por %p3966_p2, %p3965_p1 }
 0x48c   :  { %v3023_v3 = vmul.f32 0.125, %v2977_v58  ;;  %v3031_v4 = vmul.f32 %v3015_v37, %v3015_v37  ;;  %v3025_v6 = vmul.f32 0.125, %v2989_v61  ;;  %v3033_v32 = vmul.f32 %v3017_v53, %v3017_v53 }
 0x48d   :  { %v3038_v31 = vsub.f32 %v3022_v0, %v3030_v1  ;;  %v3040_v33 = vsub.f32 %v3024_v62, %v3032_v2  ;;  %v3054_v16 = vsub.f32 %v4296_v50, %v3014_v56  ;;  %v3090_v17 = vrot.slane %v4323_v14, %v4179_v19  ;;  %p3968_p4 = pnand %p3967_p3, %p3961_p0 }
 0x48e   :  { %v3039_v34 = vsub.f32 %v3023_v3, %v3031_v4  ;;  %v3041_v5 = vsub.f32 %v3025_v6, %v3033_v32  ;;  %v3056_v23 = vsub.f32 %v4298_v54, %v3016_v57  ;;  %v3098_v25 = vrot.slane %v4323_v14, %v4241_v22 }
 0x48f   :  { %v3046_v36 = vmax.f32 %v3038_v31, 0.0  ;;  %v3048_v7 = vmax.f32 %v3040_v33, 0.0  ;;  %v3139_v48 = vrot.slane %v4328_v15, %v4179_v19  ;;  %v3055_v49 = vsub.f32 %v4306_v59, %v3015_v37 }
 0x490   :  { %v3047_v13 = vmax.f32 %v3039_v34, 0.0  ;;  %v3049_v9 = vmax.f32 %v3041_v5, 0.0  ;;  %v3094_v51 = vrot.slane %v4323_v14, %v4185_v21  ;;  %v3147_v27 = vrot.slane %v4328_v15, %v4241_v22 }
 0x491   :  { %v3062_v8 = vadd.f32 0.8, %v3046_v36  ;;  %v3064_v10 = vadd.f32 0.8, %v3048_v7  ;;  %v3057_v54 = vsub.f32 %v4308_v63, %v3017_v53  ;;  %v3102_v28 = vrot.slane %v4323_v14, %v4247_v24 }
 0x492   :  { %v3063_v11 = vadd.f32 0.8, %v3047_v13  ;;  %v3065_v12 = vadd.f32 0.8, %v3049_v9  ;;  %v3143_v19 = vrot.slane %v4328_v15, %v4185_v21  ;;  %v3151_v38 = vrot.slane %v4328_v15, %v4247_v24 }
 0x493   :  { %3790 = vrsqrt.f32 %v3062_v8 }
 0x494   :  { %3792 = vrsqrt.f32 %v3064_v10 }
 0x495   :  { %3794 = vrsqrt.f32 %v3063_v11 }
 0x496   :  { %3796 = vrsqrt.f32 %v3065_v12 }
 0x49d   :  { %v3791_v20 = vpop.eup %3790 }
 0x49e   :  { %v3793_v26 = vpop.eup %3792  ;;  %v3078_v42 = vmul.f32 %v3791_v20, %v3054_v16 }
 0x49f   :  { %v3795_v50 = vpop.eup %3794  ;;  %v3080_v52 = vmul.f32 %v3793_v26, %v3056_v23 }
 0x4a0   :  { %v3797_v29 = vpop.eup %3796  ;;  %v3127_v30 = vmul.f32 %v3090_v17, %v3078_v42  ;;  %v3079_v35 = vmul.f32 %v3795_v50, %v3055_v49 }
 0x4a1   :  { %v3129_v59 = vmul.f32 %v3098_v25, %v3080_v52  ;;  %v3081_v60 = vmul.f32 %v3797_v29, %v3057_v54 }
 0x4a2   :  { %v3176_v40 = vadd.f32 %v3139_v48, %v3127_v30  ;;  %v3128_v41 = vmul.f32 %v3094_v51, %v3079_v35 }
 0x4a3   :  { %v3178_v43 = vadd.f32 %v3147_v27, %v3129_v59  ;;  %v3130_v22 = vmul.f32 %v3102_v28, %v3081_v60 }
 0x4a4   :  { %v3177_v44 = vadd.f32 %v3143_v19, %v3128_v41  ;;  %vm3184_vm9 = vcmp.gt.f32.partialorder %v3176_v40, 0.0  ;;  %v3192_v45 = vmul.f32 0.2, %v3176_v40 }
 0x4a5   :  { %v3179_v63 = vadd.f32 %v3151_v38, %v3130_v22  ;;  %vm3186_vm10 = vcmp.gt.f32.partialorder %v3178_v43, 0.0  ;;  %v3194_v55 = vmul.f32 0.2, %v3178_v43 }
 0x4a6   :  { %vm3185_vm11 = vcmp.gt.f32.partialorder %v3177_v44, 0.0  ;;  %v3193_v39 = vmul.f32 0.2, %v3177_v44  ;;  %v3200_v21 = vsel %vm3184_vm9, %v3176_v40, %v3192_v45 }
 0x4a7   :  { %vm3187_vm12 = vcmp.gt.f32.partialorder %v3179_v63, 0.0  ;;  %v3195_v46 = vmul.f32 0.2, %v3179_v63  ;;  %v3202_v56 = vsel %vm3186_vm10, %v3178_v43, %v3194_v55 }
 0x4a8   :  { %v3201_v47 = vsel %vm3185_vm11, %v3177_v44, %v3193_v39 }
 0x4a9   :  { %v3203_v57 = vsel %vm3187_vm12, %v3179_v63, %v3195_v46  ;;  %v3606_v58 = vpack.c.bf16 %v3201_v47, %v3200_v21 }
 0x4aa   :  { %v3607_v24 = vpack.c.bf16 %v3203_v57, %v3202_v56 }
 0x4ab   :  { %3240 = vst [vmem:[#allocation14] sm:$0xff] %v3606_v58 }
 0x4ac   :  { %3241 = vst [vmem:[#allocation14 + $0x8] sm:$0xff] %v3607_v24 }
 0x4fc   :  { %v4350_v37 = vpop.f32.mrb[12].mxu0 }
 0x4fd   :  { %v2934_v61 = vrot.slane %v4350_v37, 4  ;;  %v2962_v53 = vmul.f32 %v4350_v37, %v4350_v37  ;;  %v4355_v0 = vpop.f32.mrb[12].mxu1  ;;  %v4357_v1 = vpop.f32.mrb[13].mxu0 }
 0x4fe   :  { %v2946_v62 = vrot.slane %v4355_v0, 4  ;;  %v2964_v2 = vmul.f32 %v4355_v0, %v4355_v0  ;;  %v2940_v3 = vrot.slane %v4357_v1, 4  ;;  %v2963_v4 = vmul.f32 %v4357_v1, %v4357_v1  ;;  %v4365_v31 = vpop.f32.mrb[13].mxu1  ;;  %v2823_v6 = vpop.f32.mrb[14].mxu0 }
 0x4ff   :  { %v2935_v32 = vadd.f32 %v2934_v61, %v4350_v37  ;;  %v2990_v33 = vrot.slane %v2962_v53, 4  ;;  %v2952_v34 = vrot.slane %v4365_v31, 4  ;;  %v2965_v36 = vmul.f32 %v4365_v31, %v4365_v31  ;;  %v2905_v5 = vpop.f32.mrb[14].mxu1  ;;  %v2824_v7 = vpop.f32.mrb[15].mxu0 }
 0x500   :  { %v2947_v13 = vadd.f32 %v2946_v62, %v4355_v0  ;;  %v3002_v8 = vrot.slane %v2964_v2, 4  ;;  %v2941_v9 = vadd.f32 %v2940_v3, %v4357_v1  ;;  %v2996_v10 = vrot.slane %v2963_v4, 4  ;;  %v2906_v11 = vpop.f32.mrb[15].mxu1 }
 0x501   :  { %v2936_v12 = vrot.slane %v2935_v32, 2  ;;  %v2991_v16 = vadd.f32 %v2990_v33, %v2962_v53  ;;  %v2953_v17 = vadd.f32 %v2952_v34, %v4365_v31  ;;  %v3008_v20 = vrot.slane %v2965_v36, 4 }
 0x502   :  { %v2948_v23 = vrot.slane %v2947_v13, 2  ;;  %v3003_v25 = vadd.f32 %v3002_v8, %v2964_v2  ;;  %v2942_v26 = vrot.slane %v2941_v9, 2  ;;  %v2997_v42 = vadd.f32 %v2996_v10, %v2963_v4 }
 0x503   :  { %v2937_v48 = vadd.f32 %v2936_v12, %v2935_v32  ;;  %v2992_v49 = vrot.slane %v2991_v16, 2  ;;  %v2954_v51 = vrot.slane %v2953_v17, 2  ;;  %v3009_v50 = vadd.f32 %v3008_v20, %v2965_v36 }
 0x504   :  { %v2949_v52 = vadd.f32 %v2948_v23, %v2947_v13  ;;  %v3004_v27 = vrot.slane %v3003_v25, 2  ;;  %v2943_v54 = vadd.f32 %v2942_v26, %v2941_v9  ;;  %v2998_v28 = vrot.slane %v2997_v42, 2 }
 0x505   :  { %v2938_v29 = vrot.slane %v2937_v48, 1  ;;  %v2993_v30 = vadd.f32 %v2992_v49, %v2991_v16  ;;  %v2955_v35 = vadd.f32 %v2954_v51, %v2953_v17  ;;  %v3010_v19 = vrot.slane %v3009_v50, 2 }
 0x506   :  { %v2950_v59 = vrot.slane %v2949_v52, 1  ;;  %v3005_v60 = vadd.f32 %v3004_v27, %v3003_v25  ;;  %v2944_v38 = vrot.slane %v2943_v54, 1  ;;  %v2999_v40 = vadd.f32 %v2998_v28, %v2997_v42 }
 0x507   :  { %v2939_v41 = vadd.f32 %v2938_v29, %v2937_v48  ;;  %v2994_v43 = vrot.slane %v2993_v30, 1  ;;  %v2956_v22 = vrot.slane %v2955_v35, 1  ;;  %v3011_v44 = vadd.f32 %v3010_v19, %v3009_v50 }
 0x508   :  { %v2951_v63 = vadd.f32 %v2950_v59, %v2949_v52  ;;  %v3006_v45 = vrot.slane %v3005_v60, 1  ;;  %v2945_v55 = vadd.f32 %v2944_v38, %v2943_v54  ;;  %v3000_v39 = vrot.slane %v2999_v40, 1 }
 0x509   :  { %v2995_v46 = vadd.f32 %v2994_v43, %v2993_v30  ;;  %v3018_v21 = vmul.f32 0.125, %v2939_v41  ;;  %v2957_v56 = vadd.f32 %v2956_v22, %v2955_v35  ;;  %v3012_v47 = vrot.slane %v3011_v44, 1 }
 0x50a   :  { %v3007_v57 = vadd.f32 %v3006_v45, %v3005_v60  ;;  %v3020_v58 = vmul.f32 0.125, %v2951_v63  ;;  %v3001_v24 = vadd.f32 %v3000_v39, %v2999_v40  ;;  %v3019_v61 = vmul.f32 0.125, %v2945_v55 }
 0x50b   :  { %v3026_v53 = vmul.f32 0.125, %v2995_v46  ;;  %v3034_v62 = vmul.f32 %v3018_v21, %v3018_v21  ;;  %v3013_v2 = vadd.f32 %v3012_v47, %v3011_v44  ;;  %v3021_v34 = vmul.f32 0.125, %v2957_v56 }
 0x50c   :  { %v3028_v3 = vmul.f32 0.125, %v3007_v57  ;;  %v3036_v4 = vmul.f32 %v3020_v58, %v3020_v58  ;;  %v3027_v6 = vmul.f32 0.125, %v3001_v24  ;;  %v3035_v33 = vmul.f32 %v3019_v61, %v3019_v61 }
 0x50d   :  { %v3042_v32 = vsub.f32 %v3026_v53, %v3034_v62  ;;  %v3029_v5 = vmul.f32 0.125, %v3013_v2  ;;  %v3037_v8 = vmul.f32 %v3021_v34, %v3021_v34  ;;  %v3105_v25 = vsub.s32 4, %v4176_v18 }
 0x50e   :  { %v3044_v36 = vsub.f32 %v3028_v3, %v3036_v4  ;;  %v3043_v13 = vsub.f32 %v3027_v6, %v3035_v33  ;;  %v3113_v26 = vsub.s32 6, %v4176_v18  ;;  %v3109_v42 = vsub.s32 5, %v4176_v18 }
 0x50f   :  { %v3050_v7 = vmax.f32 %v3042_v32, 0.0  ;;  %v3045_v12 = vsub.f32 %v3029_v5, %v3037_v8  ;;  %v3058_v48 = vsub.f32 %v4350_v37, %v3018_v21  ;;  %v3106_v49 = vrot.slane %v4323_v14, %v3105_v25 }
 0x510   :  { %v3052_v9 = vmax.f32 %v3044_v36, 0.0  ;;  %v3051_v11 = vmax.f32 %v3043_v13, 0.0  ;;  %v3117_v51 = vsub.s32 7, %v4176_v18  ;;  %v3060_v52 = vsub.f32 %v4355_v0, %v3020_v58 }
 0x511   :  { %v3066_v10 = vadd.f32 0.8, %v3050_v7  ;;  %v3053_v20 = vmax.f32 %v3045_v12, 0.0  ;;  %v3114_v27 = vrot.slane %v4323_v14, %v3113_v26  ;;  %v3155_v29 = vrot.slane %v4328_v15, %v3105_v25 }
 0x512   :  { %v3068_v16 = vadd.f32 0.8, %v3052_v9  ;;  %v3067_v17 = vadd.f32 0.8, %v3051_v11  ;;  %v3059_v30 = vsub.f32 %v4357_v1, %v3019_v61  ;;  %v3110_v35 = vrot.slane %v4323_v14, %v3109_v42 }
 0x513   :  { %3798 = vrsqrt.f32 %v3066_v10  ;;  %v3069_v23 = vadd.f32 0.8, %v3053_v20  ;;  %v3163_v37 = vrot.slane %v4328_v15, %v3113_v26  ;;  %v3159_v60 = vrot.slane %v4328_v15, %v3109_v42 }
 0x514   :  { %3800 = vrsqrt.f32 %v3068_v16  ;;  %v3061_v0 = vsub.f32 %v4365_v31, %v3021_v34  ;;  %v3118_v40 = vrot.slane %v4323_v14, %v3117_v51  ;;  %v3167_v1 = vrot.slane %v4328_v15, %v3117_v51 }
 0x515   :  { %3802 = vrsqrt.f32 %v3067_v17 }
 0x516   :  { %3804 = vrsqrt.f32 %v3069_v23 }
 0x51d   :  { %v3799_v50 = vpop.eup %3798 }
 0x51e   :  { %v3801_v54 = vpop.eup %3800  ;;  %v3082_v28 = vmul.f32 %v3799_v50, %v3058_v48 }
 0x51f   :  { %v3803_v19 = vpop.eup %3802  ;;  %v3084_v59 = vmul.f32 %v3801_v54, %v3060_v52 }
 0x520   :  { %v3131_v18 = vmul.f32 %v3106_v49, %v3082_v28  ;;  %v3083_v38 = vmul.f32 %v3803_v19, %v3059_v30  ;;  %v3805_v41 = vpop.eup %3804 }
 0x521   :  { %v3133_v43 = vmul.f32 %v3114_v27, %v3084_v59  ;;  %v3085_v63 = vmul.f32 %v3805_v41, %v3061_v0 }
 0x522   :  { %v3180_v22 = vadd.f32 %v3155_v29, %v3131_v18  ;;  %v3132_v44 = vmul.f32 %v3110_v35, %v3083_v38 }
 0x523   :  { %v3182_v45 = vadd.f32 %v3163_v37, %v3133_v43  ;;  %v3134_v39 = vmul.f32 %v3118_v40, %v3085_v63 }
 0x524   :  { %v3181_v55 = vadd.f32 %v3159_v60, %v3132_v44  ;;  %vm3188_vm13 = vcmp.gt.f32.partialorder %v3180_v22, 0.0  ;;  %v3196_v46 = vmul.f32 0.2, %v3180_v22 }
 0x525   :  { %vm3190_vm14 = vcmp.gt.f32.partialorder %v3182_v45, 0.0  ;;  %v3198_v21 = vmul.f32 0.2, %v3182_v45  ;;  %v3183_v56 = vadd.f32 %v3167_v1, %v3134_v39 }
 0x526   :  { %vm3189_vm15 = vcmp.gt.f32.partialorder %v3181_v55, 0.0  ;;  %v3197_v47 = vmul.f32 0.2, %v3181_v55  ;;  %v3204_v31 = vsel %vm3188_vm13, %v3180_v22, %v3196_v46 }
 0x527   :  { %vm3191_vm0 = vcmp.gt.f32.partialorder %v3183_v56, 0.0  ;;  %v3199_v14 = vmul.f32 0.2, %v3183_v56  ;;  %v3206_v58 = vsel %vm3190_vm14, %v3182_v45, %v3198_v21 }
 0x528   :  { %v3205_v57 = vsel %vm3189_vm15, %v3181_v55, %v3197_v47 }
 0x529   :  { %v3608_v24 = vpack.c.bf16 %v3205_v57, %v3204_v31  ;;  %v3207_v61 = vsel %vm3191_vm0, %v3183_v56, %v3199_v14 }
 0x52a   :  { %v3609_v15 = vpack.c.bf16 %v3207_v61, %v3206_v58 }
 0x52b   :  { %3242 = vst [vmem:[#allocation14 + $0x10] sm:$0xff] %v3608_v24 }
 0x52c   :  { %3243 = vst [vmem:[#allocation14 + $0x18] sm:$0xff] %v3609_v15 }
 0x52d   :  { %3971 = shalt.err (!%p3968_p4)
}
 0x52e   :  { %s3972_s2 = scalar_lea.hbm %s4414_s12, 512 }
 0x52f   :  { %p3973_p5 = scmp.ne.s32.totalorder %s4414_s12, %s3972_s2  ;;  %p3976_p6 = scmp.lt.u32.totalorder %s3972_s2, %s4414_s12 }
 0x531   :  { %p3978_p7 = pnand %p3976_p6, %p3973_p5 }
 0x533   :  { %3981 = shalt.err (!%p3978_p7)
}
 0x534   :  { %3253 = dma.vmem_to_hbm [thread:$0]  %s3251_s11, 512, %s4414_s12, [#allocation4]  }
 0x535   :  { %3990 = dma.done.wait [#allocation4], 512  }
 0x536   :  { %3991 = vsyncadd [#allocation4], 4294966784 }
 0x537   :  { %3257 = vsyncpa [#allocation3], 1 }
 0x538   :  { %3258 = vsyncpa [#allocation6], 1 }
 0x539   :  { %3259 = vsyncpa [#allocation9], 1 }
 0x53a   :  { %3260 = vsyncpa [#allocation12], 1 }
 0x53b   :  { %3261 = vsyncpa [#allocation4], 1 }

</bundles_post_ra>
